<compile_context>
chip_gen: v7x
topology: tpu7x:2x2x1
jax: 0.10.0
libtpu: 0.0.40
codegen_flags: <defaults>
</compile_context>

<pallas_src>
import functools
import math

import jax
import jax.numpy as jnp
from jax.experimental import pallas as pl
from jax.experimental.pallas import tpu as pltpu


# --------------------------------------------------------------------------
# Fused decoder-layer kernel (Bb batch elements per grid step)
# --------------------------------------------------------------------------
def _decoder_layer_kernel(*refs, scale, eps, has_mask):
    f32 = jnp.float32
    bf16 = jnp.bfloat16

    if has_mask:
        (x_ref, enc_ref, mask_ref,
         wo_s_ref, wo_c_ref, w1_ref, b1_ref, w2_ref, b2_ref,
         g1_ref, be1_ref, g2_ref, be2_ref, g3_ref, be3_ref, o_ref) = refs
    else:
        (x_ref, enc_ref,
         wo_s_ref, wo_c_ref, w1_ref, b1_ref, w2_ref, b2_ref,
         g1_ref, be1_ref, g2_ref, be2_ref, g3_ref, be3_ref, o_ref) = refs
        mask_ref = None

    Bb, T, D = x_ref.shape
    S = enc_ref.shape[1]

    x3 = x_ref[...].astype(f32)          # (Bb, T, D)
    x2 = x3.reshape(Bb * T, D)           # flattened rows for dense matmuls / LN
    x3_bf = x3.astype(bf16)              # hoisted cast, reused as q and k/v
    enc_bf = enc_ref[...].astype(bf16)   # (Bb, S, D)

    def layer_norm(h, g_ref, b_ref):
        # two-pass statistics (matches torch LayerNorm numerics)
        mu = jnp.mean(h, axis=-1, keepdims=True)
        hm = h - mu
        var = jnp.mean(hm * hm, axis=-1, keepdims=True)
        return hm * jax.lax.rsqrt(var + eps) * g_ref[...] + b_ref[...]

    def softmax(s):
        s = s - jnp.max(s, axis=-1, keepdims=True)
        p = jnp.exp(s)
        inv = pl.reciprocal(jnp.sum(p, axis=-1, keepdims=True), approx=True)
        return p * inv

    def attention(q_bf, kv_bf, wo_ref, mask):
        # batched score / context matmuls (bf16 operands, f32 accumulation)
        s = jnp.einsum("btd,bsd->bts", q_bf, kv_bf,
                       preferred_element_type=f32) * scale
        if mask is not None:
            s = s + mask[None, :, :]
        p = softmax(s)
        ctx = jnp.einsum("bts,bsd->btd", p.astype(bf16), kv_bf,
                         preferred_element_type=f32)
        # out_proj on flattened (Bb*T, D) rows -> full-height MXU pass
        ctx2 = ctx.reshape(Bb * T, D).astype(bf16)
        return jnp.dot(ctx2, wo_ref[...], preferred_element_type=f32)

    mask = mask_ref[...] if has_mask else None

    # ---- self-attention + residual + LayerNorm 1 (dropout = identity) ----
    sa = attention(x3_bf, x3_bf, wo_s_ref, mask)          # (Bb*T, D)
    h1 = layer_norm(x2 + sa, g1_ref, be1_ref)

    # ---- cross-attention + residual + LayerNorm 2 ----
    h1_bf3 = h1.astype(bf16).reshape(Bb, T, D)
    ca = attention(h1_bf3, enc_bf, wo_c_ref, None)
    h2 = layer_norm(h1 + ca, g2_ref, be2_ref)

    # ---- feed-forward (ReLU) + residual + LayerNorm 3 ----
    z = jnp.dot(h2.astype(bf16), w1_ref[...],
                preferred_element_type=f32) + b1_ref[...]
    z = jnp.maximum(z, 0.0)
    f = jnp.dot(z.astype(bf16), w2_ref[...],
                preferred_element_type=f32) + b2_ref[...]
    out = layer_norm(h2 + f, g3_ref, be3_ref)

    o_ref[...] = out.reshape(Bb, T, D).astype(o_ref.dtype)


def decoder_layer(x, encoder_output, params, n_heads, tgt_mask=None, eps=1e-5,
                  batch_block=None):
    """x: (B, T, D); encoder_output: (B, S, D); tgt_mask: None or (T, T)."""
    B, T, D = x.shape
    _, S, _ = encoder_output.shape
    Dff = params["w1"].shape[1]
    scale = 1.0 / math.sqrt(D // n_heads)

    # Single-TC chips (v5e/v6e): collapse the grid (whole batch, one step).
    # On dual-TC v7x pass batch_block = B // 2 for one balanced step per core.
    if batch_block is None:
        batch_block = B
    Bb = batch_block
    assert B % Bb == 0, "batch_block must divide batch"
    grid = (B // Bb,)

    has_mask = tgt_mask is not None

    # Weights pre-cast to bf16 (halves HBM traffic / VMEM); accumulation is f32.
    wo_s = params["wo_self"].astype(jnp.bfloat16)
    wo_c = params["wo_cross"].astype(jnp.bfloat16)
    w1 = params["w1"].astype(jnp.bfloat16)
    w2 = params["w2"].astype(jnp.bfloat16)

    def row(v):  # 1-D params -> (1, N) so BlockSpec rank matches array rank
        return v.reshape(1, -1).astype(jnp.float32)

    operands = [x, encoder_output]
    in_specs = [
        pl.BlockSpec((Bb, T, D), lambda b: (b, 0, 0)),   # x
        pl.BlockSpec((Bb, S, D), lambda b: (b, 0, 0)),   # encoder_output
    ]
    if has_mask:
        mask = jnp.broadcast_to(tgt_mask, (T, T)).astype(jnp.float32)
        operands.append(mask)
        in_specs.append(pl.BlockSpec((T, T), lambda b: (0, 0)))

    # Grid-invariant weights / biases / LN params (constant block index).
    consts = [
        wo_s, wo_c, w1, row(params["b1"]), w2, row(params["b2"]),
        row(params["g1"]), row(params["be1"]),
        row(params["g2"]), row(params["be2"]),
        row(params["g3"]), row(params["be3"]),
    ]
    for a in consts:
        operands.append(a)
        in_specs.append(
            pl.BlockSpec(a.shape, lambda b, nd=a.ndim: (0,) * nd))

    # Advisory cost estimate so XLA can schedule around this small custom call.
    flops = 2 * B * T * (2 * T * D + 2 * S * D + 2 * D * D + 2 * D * Dff)
    transcendentals = B * T * (T + S)                       # softmax exps
    bytes_accessed = ((x.size + encoder_output.size + B * T * D) * 4
                      + (wo_s.size + wo_c.size + w1.size + w2.size) * 2)
    cost = pl.CostEstimate(flops=flops, transcendentals=transcendentals,
                           bytes_accessed=bytes_accessed)

    kern = functools.partial(_decoder_layer_kernel, scale=scale, eps=eps,
                             has_mask=has_mask)

    return pl.pallas_call(
        kern,
        out_shape=jax.ShapeDtypeStruct((B, T, D), x.dtype),
        grid=grid,
        in_specs=in_specs,
        out_specs=pl.BlockSpec((Bb, T, D), lambda b: (b, 0, 0)),
        compiler_params=pltpu.CompilerParams(
            dimension_semantics=("parallel",),
            vmem_limit_bytes=32 * 1024 * 1024),
        cost_estimate=cost,
    )(*operands)


# --------------------------------------------------------------------------
# Plain-JAX reference (mirrors the PyTorch forward exactly, all f32)
# --------------------------------------------------------------------------
def decoder_layer_ref(x, enc, params, n_heads, tgt_mask=None, eps=1e-5):
    D = x.shape[-1]
    scale = 1.0 / math.sqrt(D // n_heads)

    def ln(h, g, b):
        mu = h.mean(-1, keepdims=True)
        var = ((h - mu) ** 2).mean(-1, keepdims=True)
        return (h - mu) / jnp.sqrt(var + eps) * g + b

    def attn(q, k, v, wo, mask=None):
        s = jnp.einsum("btd,bsd->bts", q, k) * scale
        if mask is not None:
            s = s + mask
        p = jax.nn.softmax(s, axis=-1)
        return jnp.einsum("bts,bsd->btd", p, v) @ wo

    sa = attn(x, x, x, params["wo_self"], tgt_mask)
    h1 = ln(x + sa, params["g1"], params["be1"])
    ca = attn(h1, enc, enc, params["wo_cross"])
    h2 = ln(h1 + ca, params["g2"], params["be2"])
    z = jnp.maximum(h2 @ params["w1"] + params["b1"], 0.0)
    f = z @ params["w2"] + params["b2"]
    return ln(h2 + f, params["g3"], params["be3"])


# --------------------------------------------------------------------------
# Deterministic parameter construction + demo
# --------------------------------------------------------------------------
def make_params(key, d_model, d_ff):
    ks = jax.random.split(key, 6)

    def w(k, shape, scale=0.05):
        return (scale * jax.random.normal(k, shape)).astype(jnp.float32)

    ones = jnp.ones((d_model,), jnp.float32)
    zeros = jnp.zeros((d_model,), jnp.float32)
    return {
        # torch Linear weight is (out, in); store the transpose so y = x @ w
        # TODO(synk): query/key/value Linears exist in CustomAttention.__init__
        # but are never used in its forward(), so they are omitted here.
        "wo_self": w(ks[0], (d_model, d_model)).T,
        "wo_cross": w(ks[1], (d_model, d_model)).T,
        "w1": w(ks[2], (d_ff, d_model)).T, "b1": w(ks[3], (d_ff,)),
        "w2": w(ks[4], (d_model, d_ff)).T, "b2": w(ks[5], (d_model,)),
        "g1": ones, "be1": zeros,
        "g2": ones, "be2": zeros,
        "g3": ones, "be3": zeros,
    }


if __name__ == "__main__":
    # Small shapes consistent with the module (reduced sizes, d_model % n_heads == 0)
    d_model, n_heads, d_ff = 128, 4, 128
    B, T, S = 2, 16, 16

    key = jax.random.PRNGKey(0)
    kp, kx, ke = jax.random.split(key, 3)
    params = make_params(kp, d_model, d_ff)
    x = jax.random.normal(kx, (B, T, d_model), jnp.float32)
    enc = jax.random.normal(ke, (B, S, d_model), jnp.float32)
    # causal target mask, additive (0 on/below diagonal, large negative above)
    causal = jnp.where(jnp.tril(jnp.ones((T, T), dtype=bool)), 0.0, -1e9)
    causal = causal.astype(jnp.float32)

    out = decoder_layer(x, enc, params, n_heads, tgt_mask=causal)
    jax.block_until_ready(out)
    assert out.shape == (B, T, d_model)

    # sanity check against the f32 reference (bf16 MXU + approx recip tolerance)
    ref = decoder_layer_ref(x, enc, params, n_heads, causal)
    max_err = float(jnp.max(jnp.abs(out - ref)))
    assert max_err < 0.1, f"max abs diff vs reference: {max_err}"

    # also exercise the static no-mask path (no mask operand / DMA / add)
    out_nm = decoder_layer(x, enc, params, n_heads, tgt_mask=None)
    jax.block_until_ready(out_nm)
    ref_nm = decoder_layer_ref(x, enc, params, n_heads, None)
    assert float(jnp.max(jnp.abs(out_nm - ref_nm))) < 0.1

    print("KERNEL_OK")
</pallas_src>

<mosaic_0001>
module attributes {stable_mosaic.version = 11 : i64} {
  func.func @_decoder_layer_kernel(%arg0: i32, %arg1: memref<2x16x128xf32, #tpu.memory_space<vmem>>, %arg2: memref<2x16x128xf32, #tpu.memory_space<vmem>>, %arg3: memref<16x16xf32, #tpu.memory_space<vmem>>, %arg4: memref<128x128xbf16, #tpu.memory_space<vmem>>, %arg5: memref<128x128xbf16, #tpu.memory_space<vmem>>, %arg6: memref<128x128xbf16, #tpu.memory_space<vmem>>, %arg7: memref<1x128xf32, #tpu.memory_space<vmem>>, %arg8: memref<128x128xbf16, #tpu.memory_space<vmem>>, %arg9: memref<1x128xf32, #tpu.memory_space<vmem>>, %arg10: memref<1x128xf32, #tpu.memory_space<vmem>>, %arg11: memref<1x128xf32, #tpu.memory_space<vmem>>, %arg12: memref<1x128xf32, #tpu.memory_space<vmem>>, %arg13: memref<1x128xf32, #tpu.memory_space<vmem>>, %arg14: memref<1x128xf32, #tpu.memory_space<vmem>>, %arg15: memref<1x128xf32, #tpu.memory_space<vmem>>, %arg16: memref<2x16x128xf32, #tpu.memory_space<vmem>>) attributes {dimension_semantics = [#tpu.dimension_semantics<parallel>], iteration_bounds = array<i64: 1>, scalar_prefetch = 0 : i64, scratch_operands = 0 : i64, tpu.core_type = #tpu.core_type<tc>, window_params = [{transform_indices = @transform_0, window_bounds = array<i64: 2, 16, 128>}, {transform_indices = @transform_1, window_bounds = array<i64: 2, 16, 128>}, {pipeline_mode = #tpu.pipeline_mode<synchronous>, transform_indices = @transform_2, window_bounds = array<i64: 16, 16>}, {pipeline_mode = #tpu.pipeline_mode<synchronous>, transform_indices = @transform_3, window_bounds = array<i64: 128, 128>}, {pipeline_mode = #tpu.pipeline_mode<synchronous>, transform_indices = @transform_4, window_bounds = array<i64: 128, 128>}, {pipeline_mode = #tpu.pipeline_mode<synchronous>, transform_indices = @transform_5, window_bounds = array<i64: 128, 128>}, {pipeline_mode = #tpu.pipeline_mode<synchronous>, transform_indices = @transform_6, window_bounds = array<i64: 1, 128>}, {pipeline_mode = #tpu.pipeline_mode<synchronous>, transform_indices = @transform_7, window_bounds = array<i64: 128, 128>}, {pipeline_mode = #tpu.pipeline_mode<synchronous>, transform_indices = @transform_8, window_bounds = array<i64: 1, 128>}, {pipeline_mode = #tpu.pipeline_mode<synchronous>, transform_indices = @transform_9, window_bounds = array<i64: 1, 128>}, {pipeline_mode = #tpu.pipeline_mode<synchronous>, transform_indices = @transform_10, window_bounds = array<i64: 1, 128>}, {pipeline_mode = #tpu.pipeline_mode<synchronous>, transform_indices = @transform_11, window_bounds = array<i64: 1, 128>}, {pipeline_mode = #tpu.pipeline_mode<synchronous>, transform_indices = @transform_12, window_bounds = array<i64: 1, 128>}, {pipeline_mode = #tpu.pipeline_mode<synchronous>, transform_indices = @transform_13, window_bounds = array<i64: 1, 128>}, {pipeline_mode = #tpu.pipeline_mode<synchronous>, transform_indices = @transform_14, window_bounds = array<i64: 1, 128>}, {transform_indices = @transform_15, window_bounds = array<i64: 2, 16, 128>}]} {
    %c0 = arith.constant 0 : index
    %c0_0 = arith.constant 0 : index
    %c0_1 = arith.constant 0 : index
    %0 = vector.load %arg1[%c0, %c0_0, %c0_1] : memref<2x16x128xf32, #tpu.memory_space<vmem>>, vector<2x16x128xf32>
    %1 = vector.shape_cast %0 : vector<2x16x128xf32> to vector<32x128xf32>
    %2 = arith.truncf %0 : vector<2x16x128xf32> to vector<2x16x128xbf16>
    %c0_2 = arith.constant 0 : index
    %c0_3 = arith.constant 0 : index
    %c0_4 = arith.constant 0 : index
    %3 = vector.load %arg2[%c0_2, %c0_3, %c0_4] : memref<2x16x128xf32, #tpu.memory_space<vmem>>, vector<2x16x128xf32>
    %4 = arith.truncf %3 : vector<2x16x128xf32> to vector<2x16x128xbf16>
    %c0_5 = arith.constant 0 : index
    %c0_6 = arith.constant 0 : index
    %5 = vector.load %arg3[%c0_5, %c0_6] : memref<16x16xf32, #tpu.memory_space<vmem>>, vector<16x16xf32>
    "tpu.trace_start"() <{level = 10 : i32, message = "btd,bsd->bts"}> : () -> ()
    %cst = arith.constant dense<0.000000e+00> : vector<2x16x16xf32>
    %6 = tpu.matmul %2, %2, %cst {dimension_numbers = #tpu.dot_dimension_numbers<[2], [2], [1], [1], [0, 0, 0, 1, 1, 1], [0], [0]>} : vector<2x16x128xbf16>, vector<2x16x128xbf16>, vector<2x16x16xf32> -> vector<2x16x16xf32>
    "tpu.trace_stop"() : () -> ()
    %cst_7 = arith.constant 0.176776692 : f32
    %7 = vector.broadcast %cst_7 : f32 to vector<2x16x16xf32>
    %8 = arith.mulf %6, %7 : vector<2x16x16xf32>
    %9 = vector.shape_cast %5 : vector<16x16xf32> to vector<1x16x16xf32>
    %10 = vector.broadcast %9 : vector<1x16x16xf32> to vector<2x16x16xf32>
    %11 = arith.addf %8, %10 : vector<2x16x16xf32>
    %cst_8 = arith.constant dense<0xFF800000> : vector<2x16xf32>
    %12 = vector.multi_reduction <maximumf>, %11, %cst_8 [2] : vector<2x16x16xf32> to vector<2x16xf32>
    %13 = vector.shape_cast %12 : vector<2x16xf32> to vector<2x16x1xf32>
    %14 = vector.broadcast %13 : vector<2x16x1xf32> to vector<2x16x16xf32>
    %15 = arith.subf %11, %14 : vector<2x16x16xf32>
    %16 = math.exp %15 : vector<2x16x16xf32>
    %cst_9 = arith.constant dense<0.000000e+00> : vector<2x16xf32>
    %17 = vector.multi_reduction <add>, %16, %cst_9 [2] : vector<2x16x16xf32> to vector<2x16xf32>
    %18 = vector.shape_cast %17 : vector<2x16xf32> to vector<2x16x1xf32>
    %19 = tpu.reciprocal %18 {approx = true} : vector<2x16x1xf32> -> vector<2x16x1xf32>
    %20 = vector.broadcast %19 : vector<2x16x1xf32> to vector<2x16x16xf32>
    %21 = arith.mulf %16, %20 : vector<2x16x16xf32>
    %22 = arith.truncf %21 : vector<2x16x16xf32> to vector<2x16x16xbf16>
    "tpu.trace_start"() <{level = 10 : i32, message = "bts,bsd->btd"}> : () -> ()
    %cst_10 = arith.constant dense<0.000000e+00> : vector<2x16x128xf32>
    %23 = tpu.matmul %22, %2, %cst_10 {dimension_numbers = #tpu.dot_dimension_numbers<[2], [1], [1], [2], [0, 0, 0, 1, 1, 2], [0], [0]>} : vector<2x16x16xbf16>, vector<2x16x128xbf16>, vector<2x16x128xf32> -> vector<2x16x128xf32>
    "tpu.trace_stop"() : () -> ()
    %24 = vector.shape_cast %23 : vector<2x16x128xf32> to vector<32x128xf32>
    %25 = arith.truncf %24 : vector<32x128xf32> to vector<32x128xbf16>
    %c0_11 = arith.constant 0 : index
    %c0_12 = arith.constant 0 : index
    %26 = vector.load %arg4[%c0_11, %c0_12] : memref<128x128xbf16, #tpu.memory_space<vmem>>, vector<128x128xbf16>
    %cst_13 = arith.constant dense<0.000000e+00> : vector<32x128xf32>
    %27 = tpu.matmul %25, %26, %cst_13 {dimension_numbers = #tpu.dot_dimension_numbers<[1], [0], [0], [1], [0, 0, 1, 1], [], []>} : vector<32x128xbf16>, vector<128x128xbf16>, vector<32x128xf32> -> vector<32x128xf32>
    %28 = arith.addf %1, %27 : vector<32x128xf32>
    %cst_14 = arith.constant dense<0.000000e+00> : vector<32xf32>
    %29 = vector.multi_reduction <add>, %28, %cst_14 [1] : vector<32x128xf32> to vector<32xf32>
    %30 = vector.shape_cast %29 : vector<32xf32> to vector<32x1xf32>
    %cst_15 = arith.constant 1.280000e+02 : f32
    %31 = vector.broadcast %cst_15 : f32 to vector<32x1xf32>
    %32 = arith.divf %30, %31 : vector<32x1xf32>
    %33 = vector.broadcast %32 : vector<32x1xf32> to vector<32x128xf32>
    %34 = arith.subf %28, %33 : vector<32x128xf32>
    %35 = arith.mulf %34, %34 : vector<32x128xf32>
    %cst_16 = arith.constant dense<0.000000e+00> : vector<32xf32>
    %36 = vector.multi_reduction <add>, %35, %cst_16 [1] : vector<32x128xf32> to vector<32xf32>
    %37 = vector.shape_cast %36 : vector<32xf32> to vector<32x1xf32>
    %cst_17 = arith.constant 1.280000e+02 : f32
    %38 = vector.broadcast %cst_17 : f32 to vector<32x1xf32>
    %39 = arith.divf %37, %38 : vector<32x1xf32>
    %cst_18 = arith.constant 9.99999974E-6 : f32
    %40 = vector.broadcast %cst_18 : f32 to vector<32x1xf32>
    %41 = arith.addf %39, %40 : vector<32x1xf32>
    %42 = math.rsqrt %41 : vector<32x1xf32>
    %43 = vector.broadcast %42 : vector<32x1xf32> to vector<32x128xf32>
    %44 = arith.mulf %34, %43 : vector<32x128xf32>
    %c0_19 = arith.constant 0 : index
    %c0_20 = arith.constant 0 : index
    %45 = vector.load %arg10[%c0_19, %c0_20] : memref<1x128xf32, #tpu.memory_space<vmem>>, vector<1x128xf32>
    %46 = vector.broadcast %45 : vector<1x128xf32> to vector<32x128xf32>
    %47 = arith.mulf %44, %46 : vector<32x128xf32>
    %c0_21 = arith.constant 0 : index
    %c0_22 = arith.constant 0 : index
    %48 = vector.load %arg11[%c0_21, %c0_22] : memref<1x128xf32, #tpu.memory_space<vmem>>, vector<1x128xf32>
    %49 = vector.broadcast %48 : vector<1x128xf32> to vector<32x128xf32>
    %50 = arith.addf %47, %49 : vector<32x128xf32>
    %51 = arith.truncf %50 : vector<32x128xf32> to vector<32x128xbf16>
    %52 = vector.shape_cast %51 : vector<32x128xbf16> to vector<2x16x128xbf16>
    "tpu.trace_start"() <{level = 10 : i32, message = "btd,bsd->bts"}> : () -> ()
    %cst_23 = arith.constant dense<0.000000e+00> : vector<2x16x16xf32>
    %53 = tpu.matmul %52, %4, %cst_23 {dimension_numbers = #tpu.dot_dimension_numbers<[2], [2], [1], [1], [0, 0, 0, 1, 1, 1], [0], [0]>} : vector<2x16x128xbf16>, vector<2x16x128xbf16>, vector<2x16x16xf32> -> vector<2x16x16xf32>
    "tpu.trace_stop"() : () -> ()
    %cst_24 = arith.constant 0.176776692 : f32
    %54 = vector.broadcast %cst_24 : f32 to vector<2x16x16xf32>
    %55 = arith.mulf %53, %54 : vector<2x16x16xf32>
    %cst_25 = arith.constant dense<0xFF800000> : vector<2x16xf32>
    %56 = vector.multi_reduction <maximumf>, %55, %cst_25 [2] : vector<2x16x16xf32> to vector<2x16xf32>
    %57 = vector.shape_cast %56 : vector<2x16xf32> to vector<2x16x1xf32>
    %58 = vector.broadcast %57 : vector<2x16x1xf32> to vector<2x16x16xf32>
    %59 = arith.subf %55, %58 : vector<2x16x16xf32>
    %60 = math.exp %59 : vector<2x16x16xf32>
    %cst_26 = arith.constant dense<0.000000e+00> : vector<2x16xf32>
    %61 = vector.multi_reduction <add>, %60, %cst_26 [2] : vector<2x16x16xf32> to vector<2x16xf32>
    %62 = vector.shape_cast %61 : vector<2x16xf32> to vector<2x16x1xf32>
    %63 = tpu.reciprocal %62 {approx = true} : vector<2x16x1xf32> -> vector<2x16x1xf32>
    %64 = vector.broadcast %63 : vector<2x16x1xf32> to vector<2x16x16xf32>
    %65 = arith.mulf %60, %64 : vector<2x16x16xf32>
    %66 = arith.truncf %65 : vector<2x16x16xf32> to vector<2x16x16xbf16>
    "tpu.trace_start"() <{level = 10 : i32, message = "bts,bsd->btd"}> : () -> ()
    %cst_27 = arith.constant dense<0.000000e+00> : vector<2x16x128xf32>
    %67 = tpu.matmul %66, %4, %cst_27 {dimension_numbers = #tpu.dot_dimension_numbers<[2], [1], [1], [2], [0, 0, 0, 1, 1, 2], [0], [0]>} : vector<2x16x16xbf16>, vector<2x16x128xbf16>, vector<2x16x128xf32> -> vector<2x16x128xf32>
    "tpu.trace_stop"() : () -> ()
    %68 = vector.shape_cast %67 : vector<2x16x128xf32> to vector<32x128xf32>
    %69 = arith.truncf %68 : vector<32x128xf32> to vector<32x128xbf16>
    %c0_28 = arith.constant 0 : index
    %c0_29 = arith.constant 0 : index
    %70 = vector.load %arg5[%c0_28, %c0_29] : memref<128x128xbf16, #tpu.memory_space<vmem>>, vector<128x128xbf16>
    %cst_30 = arith.constant dense<0.000000e+00> : vector<32x128xf32>
    %71 = tpu.matmul %69, %70, %cst_30 {dimension_numbers = #tpu.dot_dimension_numbers<[1], [0], [0], [1], [0, 0, 1, 1], [], []>} : vector<32x128xbf16>, vector<128x128xbf16>, vector<32x128xf32> -> vector<32x128xf32>
    %72 = arith.addf %50, %71 : vector<32x128xf32>
    %cst_31 = arith.constant dense<0.000000e+00> : vector<32xf32>
    %73 = vector.multi_reduction <add>, %72, %cst_31 [1] : vector<32x128xf32> to vector<32xf32>
    %74 = vector.shape_cast %73 : vector<32xf32> to vector<32x1xf32>
    %cst_32 = arith.constant 1.280000e+02 : f32
    %75 = vector.broadcast %cst_32 : f32 to vector<32x1xf32>
    %76 = arith.divf %74, %75 : vector<32x1xf32>
    %77 = vector.broadcast %76 : vector<32x1xf32> to vector<32x128xf32>
    %78 = arith.subf %72, %77 : vector<32x128xf32>
    %79 = arith.mulf %78, %78 : vector<32x128xf32>
    %cst_33 = arith.constant dense<0.000000e+00> : vector<32xf32>
    %80 = vector.multi_reduction <add>, %79, %cst_33 [1] : vector<32x128xf32> to vector<32xf32>
    %81 = vector.shape_cast %80 : vector<32xf32> to vector<32x1xf32>
    %cst_34 = arith.constant 1.280000e+02 : f32
    %82 = vector.broadcast %cst_34 : f32 to vector<32x1xf32>
    %83 = arith.divf %81, %82 : vector<32x1xf32>
    %cst_35 = arith.constant 9.99999974E-6 : f32
    %84 = vector.broadcast %cst_35 : f32 to vector<32x1xf32>
    %85 = arith.addf %83, %84 : vector<32x1xf32>
    %86 = math.rsqrt %85 : vector<32x1xf32>
    %87 = vector.broadcast %86 : vector<32x1xf32> to vector<32x128xf32>
    %88 = arith.mulf %78, %87 : vector<32x128xf32>
    %c0_36 = arith.constant 0 : index
    %c0_37 = arith.constant 0 : index
    %89 = vector.load %arg12[%c0_36, %c0_37] : memref<1x128xf32, #tpu.memory_space<vmem>>, vector<1x128xf32>
    %90 = vector.broadcast %89 : vector<1x128xf32> to vector<32x128xf32>
    %91 = arith.mulf %88, %90 : vector<32x128xf32>
    %c0_38 = arith.constant 0 : index
    %c0_39 = arith.constant 0 : index
    %92 = vector.load %arg13[%c0_38, %c0_39] : memref<1x128xf32, #tpu.memory_space<vmem>>, vector<1x128xf32>
    %93 = vector.broadcast %92 : vector<1x128xf32> to vector<32x128xf32>
    %94 = arith.addf %91, %93 : vector<32x128xf32>
    %95 = arith.truncf %94 : vector<32x128xf32> to vector<32x128xbf16>
    %c0_40 = arith.constant 0 : index
    %c0_41 = arith.constant 0 : index
    %96 = vector.load %arg6[%c0_40, %c0_41] : memref<128x128xbf16, #tpu.memory_space<vmem>>, vector<128x128xbf16>
    %cst_42 = arith.constant dense<0.000000e+00> : vector<32x128xf32>
    %97 = tpu.matmul %95, %96, %cst_42 {dimension_numbers = #tpu.dot_dimension_numbers<[1], [0], [0], [1], [0, 0, 1, 1], [], []>} : vector<32x128xbf16>, vector<128x128xbf16>, vector<32x128xf32> -> vector<32x128xf32>
    %c0_43 = arith.constant 0 : index
    %c0_44 = arith.constant 0 : index
    %98 = vector.load %arg7[%c0_43, %c0_44] : memref<1x128xf32, #tpu.memory_space<vmem>>, vector<1x128xf32>
    %99 = vector.broadcast %98 : vector<1x128xf32> to vector<32x128xf32>
    %100 = arith.addf %97, %99 : vector<32x128xf32>
    %cst_45 = arith.constant 0.000000e+00 : f32
    %101 = vector.broadcast %cst_45 : f32 to vector<32x128xf32>
    %102 = arith.maximumf %100, %101 : vector<32x128xf32>
    %103 = arith.truncf %102 : vector<32x128xf32> to vector<32x128xbf16>
    %c0_46 = arith.constant 0 : index
    %c0_47 = arith.constant 0 : index
    %104 = vector.load %arg8[%c0_46, %c0_47] : memref<128x128xbf16, #tpu.memory_space<vmem>>, vector<128x128xbf16>
    %cst_48 = arith.constant dense<0.000000e+00> : vector<32x128xf32>
    %105 = tpu.matmul %103, %104, %cst_48 {dimension_numbers = #tpu.dot_dimension_numbers<[1], [0], [0], [1], [0, 0, 1, 1], [], []>} : vector<32x128xbf16>, vector<128x128xbf16>, vector<32x128xf32> -> vector<32x128xf32>
    %c0_49 = arith.constant 0 : index
    %c0_50 = arith.constant 0 : index
    %106 = vector.load %arg9[%c0_49, %c0_50] : memref<1x128xf32, #tpu.memory_space<vmem>>, vector<1x128xf32>
    %107 = vector.broadcast %106 : vector<1x128xf32> to vector<32x128xf32>
    %108 = arith.addf %105, %107 : vector<32x128xf32>
    %109 = arith.addf %94, %108 : vector<32x128xf32>
    %cst_51 = arith.constant dense<0.000000e+00> : vector<32xf32>
    %110 = vector.multi_reduction <add>, %109, %cst_51 [1] : vector<32x128xf32> to vector<32xf32>
    %111 = vector.shape_cast %110 : vector<32xf32> to vector<32x1xf32>
    %cst_52 = arith.constant 1.280000e+02 : f32
    %112 = vector.broadcast %cst_52 : f32 to vector<32x1xf32>
    %113 = arith.divf %111, %112 : vector<32x1xf32>
    %114 = vector.broadcast %113 : vector<32x1xf32> to vector<32x128xf32>
    %115 = arith.subf %109, %114 : vector<32x128xf32>
    %116 = arith.mulf %115, %115 : vector<32x128xf32>
    %cst_53 = arith.constant dense<0.000000e+00> : vector<32xf32>
    %117 = vector.multi_reduction <add>, %116, %cst_53 [1] : vector<32x128xf32> to vector<32xf32>
    %118 = vector.shape_cast %117 : vector<32xf32> to vector<32x1xf32>
    %cst_54 = arith.constant 1.280000e+02 : f32
    %119 = vector.broadcast %cst_54 : f32 to vector<32x1xf32>
    %120 = arith.divf %118, %119 : vector<32x1xf32>
    %cst_55 = arith.constant 9.99999974E-6 : f32
    %121 = vector.broadcast %cst_55 : f32 to vector<32x1xf32>
    %122 = arith.addf %120, %121 : vector<32x1xf32>
    %123 = math.rsqrt %122 : vector<32x1xf32>
    %124 = vector.broadcast %123 : vector<32x1xf32> to vector<32x128xf32>
    %125 = arith.mulf %115, %124 : vector<32x128xf32>
    %c0_56 = arith.constant 0 : index
    %c0_57 = arith.constant 0 : index
    %126 = vector.load %arg14[%c0_56, %c0_57] : memref<1x128xf32, #tpu.memory_space<vmem>>, vector<1x128xf32>
    %127 = vector.broadcast %126 : vector<1x128xf32> to vector<32x128xf32>
    %128 = arith.mulf %125, %127 : vector<32x128xf32>
    %c0_58 = arith.constant 0 : index
    %c0_59 = arith.constant 0 : index
    %129 = vector.load %arg15[%c0_58, %c0_59] : memref<1x128xf32, #tpu.memory_space<vmem>>, vector<1x128xf32>
    %130 = vector.broadcast %129 : vector<1x128xf32> to vector<32x128xf32>
    %131 = arith.addf %128, %130 : vector<32x128xf32>
    %132 = vector.shape_cast %131 : vector<32x128xf32> to vector<2x16x128xf32>
    %c0_60 = arith.constant 0 : index
    %c0_61 = arith.constant 0 : index
    %c0_62 = arith.constant 0 : index
    %133 = vector.load %arg16[%c0_60, %c0_61, %c0_62] : memref<2x16x128xf32, #tpu.memory_space<vmem>>, vector<2x16x128xf32>
    tpu.vector_store %arg16[%c0_60, %c0_61, %c0_62], %132 {strides = array<i32>} : memref<2x16x128xf32, #tpu.memory_space<vmem>>, vector<2x16x128xf32>,
    return
  }
  func.func @transform_0(%arg0: i32) -> (i32, i32, i32) {
    %c0_i32 = arith.constant 0 : i32
    %c0_i32_0 = arith.constant 0 : i32
    %c0_i32_1 = arith.constant 0 : i32
    return %arg0, %c0_i32, %c0_i32_0 : i32, i32, i32
  }
  func.func @transform_1(%arg0: i32) -> (i32, i32, i32) {
    %c0_i32 = arith.constant 0 : i32
    %c0_i32_0 = arith.constant 0 : i32
    %c0_i32_1 = arith.constant 0 : i32
    return %arg0, %c0_i32, %c0_i32_0 : i32, i32, i32
  }
  func.func @transform_2(%arg0: i32) -> (i32, i32) {
    %c0_i32 = arith.constant 0 : i32
    %c0_i32_0 = arith.constant 0 : i32
    %c0_i32_1 = arith.constant 0 : i32
    return %c0_i32, %c0_i32_0 : i32, i32
  }
  func.func @transform_3(%arg0: i32) -> (i32, i32) {
    %c0_i32 = arith.constant 0 : i32
    %c0_i32_0 = arith.constant 0 : i32
    %c0_i32_1 = arith.constant 0 : i32
    return %c0_i32, %c0_i32_0 : i32, i32
  }
  func.func @transform_4(%arg0: i32) -> (i32, i32) {
    %c0_i32 = arith.constant 0 : i32
    %c0_i32_0 = arith.constant 0 : i32
    %c0_i32_1 = arith.constant 0 : i32
    return %c0_i32, %c0_i32_0 : i32, i32
  }
  func.func @transform_5(%arg0: i32) -> (i32, i32) {
    %c0_i32 = arith.constant 0 : i32
    %c0_i32_0 = arith.constant 0 : i32
    %c0_i32_1 = arith.constant 0 : i32
    return %c0_i32, %c0_i32_0 : i32, i32
  }
  func.func @transform_6(%arg0: i32) -> (i32, i32) {
    %c0_i32 = arith.constant 0 : i32
    %c0_i32_0 = arith.constant 0 : i32
    %c0_i32_1 = arith.constant 0 : i32
    return %c0_i32, %c0_i32_0 : i32, i32
  }
  func.func @transform_7(%arg0: i32) -> (i32, i32) {
    %c0_i32 = arith.constant 0 : i32
    %c0_i32_0 = arith.constant 0 : i32
    %c0_i32_1 = arith.constant 0 : i32
    return %c0_i32, %c0_i32_0 : i32, i32
  }
  func.func @transform_8(%arg0: i32) -> (i32, i32) {
    %c0_i32 = arith.constant 0 : i32
    %c0_i32_0 = arith.constant 0 : i32
    %c0_i32_1 = arith.constant 0 : i32
    return %c0_i32, %c0_i32_0 : i32, i32
  }
  func.func @transform_9(%arg0: i32) -> (i32, i32) {
    %c0_i32 = arith.constant 0 : i32
    %c0_i32_0 = arith.constant 0 : i32
    %c0_i32_1 = arith.constant 0 : i32
    return %c0_i32, %c0_i32_0 : i32, i32
  }
  func.func @transform_10(%arg0: i32) -> (i32, i32) {
    %c0_i32 = arith.constant 0 : i32
    %c0_i32_0 = arith.constant 0 : i32
    %c0_i32_1 = arith.constant 0 : i32
    return %c0_i32, %c0_i32_0 : i32, i32
  }
  func.func @transform_11(%arg0: i32) -> (i32, i32) {
    %c0_i32 = arith.constant 0 : i32
    %c0_i32_0 = arith.constant 0 : i32
    %c0_i32_1 = arith.constant 0 : i32
    return %c0_i32, %c0_i32_0 : i32, i32
  }
  func.func @transform_12(%arg0: i32) -> (i32, i32) {
    %c0_i32 = arith.constant 0 : i32
    %c0_i32_0 = arith.constant 0 : i32
    %c0_i32_1 = arith.constant 0 : i32
    return %c0_i32, %c0_i32_0 : i32, i32
  }
  func.func @transform_13(%arg0: i32) -> (i32, i32) {
    %c0_i32 = arith.constant 0 : i32
    %c0_i32_0 = arith.constant 0 : i32
    %c0_i32_1 = arith.constant 0 : i32
    return %c0_i32, %c0_i32_0 : i32, i32
  }
  func.func @transform_14(%arg0: i32) -> (i32, i32) {
    %c0_i32 = arith.constant 0 : i32
    %c0_i32_0 = arith.constant 0 : i32
    %c0_i32_1 = arith.constant 0 : i32
    return %c0_i32, %c0_i32_0 : i32, i32
  }
  func.func @transform_15(%arg0: i32) -> (i32, i32, i32) {
    %c0_i32 = arith.constant 0 : i32
    %c0_i32_0 = arith.constant 0 : i32
    %c0_i32_1 = arith.constant 0 : i32
    return %arg0, %c0_i32, %c0_i32_0 : i32, i32, i32
  }
}

</mosaic_0001>

<bundles_post_ra>
// kernel: tpu_custom_call.1
= control target key start
LH: loop header
LB: loop body
LE: loop exit
PB: predicated region body
PF: predicated region fallthrough
CT: control target
= control target key end

     0   :  { %20 = vsyncpa [#allocation3], 0  ;;  %s2201_s0 = inlined_call_operand.hbm [shape: f32[2,16,128], index: 0, kind: input, shape index: {}]   ;;  %s2202_s1 = inlined_call_operand.hbm [shape: f32[2,16,128], index: 1, kind: input, shape index: {}]   ;;  %s2203_s2 = inlined_call_operand.hbm [shape: f32[16,16], index: 2, kind: input, shape index: {}]   ;;  %s2204_s3 = inlined_call_operand.hbm [shape: bf16[128,128], index: 3, kind: input, shape index: {}]   ;;  %s2205_s4 = inlined_call_operand.hbm [shape: bf16[128,128], index: 4, kind: input, shape index: {}]   ;;  %s2206_s5 = inlined_call_operand.hbm [shape: bf16[128,128], index: 5, kind: input, shape index: {}]   ;;  %s2207_s6 = inlined_call_operand.vmem [shape: f32[1,128], index: 6, kind: input, shape index: {}]   ;;  %s2208_s7 = inlined_call_operand.hbm [shape: bf16[128,128], index: 7, kind: input, shape index: {}]   ;;  %s2209_s8 = inlined_call_operand.vmem [shape: f32[1,128], index: 8, kind: input, shape index: {}]   ;;  %s2210_s9 = inlined_call_operand.vmem [shape: f32[1,128], index: 9, kind: input, shape index: {}]   ;;  %s2211_s10 = inlined_call_operand.vmem [shape: f32[1,128], index: 10, kind: input, shape index: {}]   ;;  %s2212_s11 = inlined_call_operand.vmem [shape: f32[1,128], index: 11, kind: input, shape index: {}]   ;;  %s2213_s12 = inlined_call_operand.vmem [shape: f32[1,128], index: 12, kind: input, shape index: {}]   ;;  %s2214_s13 = inlined_call_operand.vmem [shape: f32[1,128], index: 13, kind: input, shape index: {}]   ;;  %s2215_s14 = inlined_call_operand.vmem [shape: f32[1,128], index: 14, kind: input, shape index: {}]   ;;  %s2216_s15 = inlined_call_operand.hbm [shape: f32[2,16,128], index: 15, kind: output, shape index: {}]  }
   0x1   :  { %21 = vsyncpa [#allocation6], 0 }
   0x2   :  { %22 = vsyncpa [#allocation9], 0 }
   0x3   :  { %23 = vsyncpa [#allocation12], 0 }
   0x4   :  { %24 = vsyncpa [#allocation4], 0  ;;  %s1837_s18 = smov [#allocation5]   ;;  %s1838_s20 = smov [#allocation8]  }
   0x5   :  { %s42_s19 = sshll.u32 %s1837_s18, 4  ;;  %s66_s21 = sshll.u32 %s1838_s20, 4  ;;  %s43_s19 = int_to_ptr.vmem [resolvable:$true] %s42_s19  ;;  %s1931_s21 = int_to_ptr.vmem [resolvable:$true] %s66_s21 }
   0x6   :  { %s1651_s24 = scalar_lea.hbm %s2202_s1, 512 }
   0x7   :  { %p1652_p0 = scmp.ne.s32.totalorder %s2202_s1, %s1651_s24  ;;  %p1655_p1 = scmp.lt.u32.totalorder %s1651_s24, %s2202_s1 }
   0x9   :  { %p1657_p2 = pnand %p1655_p1, %p1652_p0 }
   0xb   :  { %1660 = shalt.err (!%p1657_p2)
}
   0xc   :  { %s1661_s29 = scalar_lea.vmem %s43_s19, 512  ;;  %p1666_p4 = scmp.lt.s32.totalorder %s43_s19, %s43_s19 }
   0xd   :  { %p1662_p3 = scmp.ne.s32.totalorder %s43_s19, %s1661_s29  ;;  %p1667_p5 = scmp.lt.s32.totalorder %s1661_s29, %s1661_s29 }
   0xf   :  { %p1668_p6 = por %p1667_p5, %p1666_p4 }
  0x11   :  { %p1669_p7 = pnand %p1668_p6, %p1662_p3 }
  0x13   :  { %1672 = shalt.err (!%p1669_p7)
}
  0x14   :  { %s2217_s30 = smov 128   ;;  %s2219_s16 = smov 8  }
  0x15   :  { %48 = dma.hbm_to_vmem [thread:$0]  %s2202_s1, 512, %s43_s19, [#allocation6], %s2217_s30, %s2217_s30, %s2219_s16  }
  0x16   :  { %s1673_s23 = scalar_lea.hbm %s2204_s3, 1024 }
  0x17   :  { %p1674_p8 = scmp.ne.s32.totalorder %s2204_s3, %s1673_s23  ;;  %p1677_p9 = scmp.lt.u32.totalorder %s1673_s23, %s2204_s3 }
  0x19   :  { %p1679_p10 = pnand %p1677_p9, %p1674_p8 }
  0x1b   :  { %1682 = shalt.err (!%p1679_p10)
}
  0x1c   :  { %s1683_s28 = scalar_lea.vmem %s1931_s21, 1024  ;;  %p1688_p12 = scmp.lt.s32.totalorder %s1931_s21, %s1931_s21 }
  0x1d   :  { %p1684_p11 = scmp.ne.s32.totalorder %s1931_s21, %s1683_s28  ;;  %p1689_p13 = scmp.lt.s32.totalorder %s1683_s28, %s1683_s28 }
  0x1f   :  { %p1690_p0 = por %p1689_p13, %p1688_p12 }
  0x21   :  { %p1691_p1 = pnand %p1690_p0, %p1684_p11 }
  0x23   :  { %1694 = shalt.err (!%p1691_p1)
}
  0x24   :  { %s1841_s1 = smov 64   ;;  %s1842_s19 = smov 4  }
  0x25   :  { %72 = dma.hbm_to_vmem [thread:$0]  %s2204_s3, 1024, %s1931_s21, [#allocation9], %s1841_s1, %s1841_s1, %s1842_s19  }
  0x26   :  { %s1843_s18 = smov [#allocation11]   ;;  %s1844_s22 = smov [#allocation2]  }
  0x27   :  { %s90_s20 = sshll.u32 %s1843_s18, 4  ;;  %s30_s23 = sshll.u32 %s1844_s22, 4  ;;  %s91_s20 = int_to_ptr.vmem [resolvable:$true] %s90_s20  ;;  %s1968_s23 = int_to_ptr.vmem [resolvable:$true] %s30_s23 }
  0x28   :  { %s1695_s26 = scalar_lea.hbm %s2206_s5, 1024 }
  0x29   :  { %p1696_p2 = scmp.ne.s32.totalorder %s2206_s5, %s1695_s26  ;;  %p1699_p3 = scmp.lt.u32.totalorder %s1695_s26, %s2206_s5 }
  0x2b   :  { %p1701_p4 = pnand %p1699_p3, %p1696_p2 }
  0x2d   :  { %1704 = shalt.err (!%p1701_p4)
}
  0x2e   :  { %s1705_s3 = scalar_lea.vmem %s91_s20, 1024  ;;  %p1710_p6 = scmp.lt.s32.totalorder %s91_s20, %s91_s20 }
  0x2f   :  { %p1706_p5 = scmp.ne.s32.totalorder %s91_s20, %s1705_s3  ;;  %p1711_p7 = scmp.lt.s32.totalorder %s1705_s3, %s1705_s3 }
  0x31   :  { %p1712_p8 = por %p1711_p7, %p1710_p6 }
  0x33   :  { %p1713_p9 = pnand %p1712_p8, %p1706_p5 }
  0x35   :  { %1716 = shalt.err (!%p1713_p9)
}
  0x36   :  { %96 = dma.hbm_to_vmem [thread:$0]  %s2206_s5, 1024, %s91_s20, [#allocation12], %s1841_s1, %s1841_s1, %s1842_s19  }
  0x37   :  { %s1717_s30 = scalar_lea.hbm %s2201_s0, 512 }
  0x38   :  { %p1718_p10 = scmp.ne.s32.totalorder %s2201_s0, %s1717_s30  ;;  %p1721_p11 = scmp.lt.u32.totalorder %s1717_s30, %s2201_s0 }
  0x3a   :  { %p1723_p12 = pnand %p1721_p11, %p1718_p10 }
  0x3c   :  { %1726 = shalt.err (!%p1723_p12)
}
  0x3d   :  { %s1727_s26 = scalar_lea.vmem %s1968_s23, 512  ;;  %p1732_p0 = scmp.lt.s32.totalorder %s1968_s23, %s1968_s23 }
  0x3e   :  { %p1728_p13 = scmp.ne.s32.totalorder %s1968_s23, %s1727_s26  ;;  %p1733_p1 = scmp.lt.s32.totalorder %s1727_s26, %s1727_s26 }
  0x40   :  { %p1734_p2 = por %p1733_p1, %p1732_p0 }
  0x42   :  { %p1735_p3 = pnand %p1734_p2, %p1728_p13 }
  0x44   :  { %1738 = shalt.err (!%p1735_p3)
}
  0x45   :  { %s2221_s5 = smov 8   ;;  %s2222_s20 = smov 128  }
  0x46   :  { %36 = dma.hbm_to_vmem [thread:$0]  %s2201_s0, 512, %s1968_s23, [#allocation3], %s2222_s20, %s2222_s20, %s2221_s5  }
  0x47   :  { %s1845_s3 = smov [#allocation7]   ;;  %s1846_s29 = smov [#allocation10]  }
  0x48   :  { %s54_s21 = sshll.u32 %s1845_s3, 4  ;;  %s78_s17 = sshll.u32 %s1846_s29, 4  ;;  %s55_s21 = int_to_ptr.vmem [resolvable:$true] %s54_s21  ;;  %s2005_s17 = int_to_ptr.vmem [resolvable:$true] %s78_s17 }
  0x49   :  { %s1739_s16 = scalar_lea.hbm %s2203_s2, 256 }
  0x4a   :  { %p1740_p4 = scmp.ne.s32.totalorder %s2203_s2, %s1739_s16  ;;  %p1743_p5 = scmp.lt.u32.totalorder %s1739_s16, %s2203_s2 }
  0x4c   :  { %p1745_p6 = pnand %p1743_p5, %p1740_p4 }
  0x4e   :  { %1748 = shalt.err (!%p1745_p6)
}
  0x4f   :  { %s1749_s0 = scalar_lea.vmem %s55_s21, 256  ;;  %p1754_p8 = scmp.lt.s32.totalorder %s55_s21, %s55_s21 }
  0x50   :  { %p1750_p7 = scmp.ne.s32.totalorder %s55_s21, %s1749_s0  ;;  %p1755_p9 = scmp.lt.s32.totalorder %s1749_s0, %s1749_s0 }
  0x52   :  { %p1756_p10 = por %p1755_p9, %p1754_p8 }
  0x54   :  { %p1757_p11 = pnand %p1756_p10, %p1750_p7 }
  0x56   :  { %1760 = shalt.err (!%p1757_p11)
}
  0x57   :  { %60 = dma.hbm_to_vmem [thread:$0]  %s2203_s2, 256, %s55_s21, [#allocation6], %s2222_s20, %s2222_s20, %s2221_s5  }
  0x58   :  { %s1761_s29 = scalar_lea.hbm %s2205_s4, 1024 }
  0x59   :  { %p1762_p12 = scmp.ne.s32.totalorder %s2205_s4, %s1761_s29  ;;  %p1765_p13 = scmp.lt.u32.totalorder %s1761_s29, %s2205_s4 }
  0x5b   :  { %p1767_p0 = pnand %p1765_p13, %p1762_p12 }
  0x5d   :  { %1770 = shalt.err (!%p1767_p0)
}
  0x5e   :  { %s1771_s24 = scalar_lea.vmem %s2005_s17, 1024  ;;  %p1776_p2 = scmp.lt.s32.totalorder %s2005_s17, %s2005_s17 }
  0x5f   :  { %p1772_p1 = scmp.ne.s32.totalorder %s2005_s17, %s1771_s24  ;;  %p1777_p3 = scmp.lt.s32.totalorder %s1771_s24, %s1771_s24 }
  0x61   :  { %p1778_p4 = por %p1777_p3, %p1776_p2 }
  0x63   :  { %p1779_p5 = pnand %p1778_p4, %p1772_p1 }
  0x65   :  { %1782 = shalt.err (!%p1779_p5)
}
  0x66   :  { %84 = dma.hbm_to_vmem [thread:$0]  %s2205_s4, 1024, %s2005_s17, [#allocation9], %s1841_s1, %s1841_s1, %s1842_s19  }
  0x67   :  { %s1847_s25 = smov [#allocation13]   ;;  %s1783_s27 = scalar_lea.hbm %s2208_s7, 1024 }
  0x68   :  { %s104_s26 = sshll.u32 %s1847_s25, 4  ;;  %p1784_p6 = scmp.ne.s32.totalorder %s2208_s7, %s1783_s27  ;;  %s105_s26 = int_to_ptr.vmem [resolvable:$true] %s104_s26 }
  0x69   :  { %p1787_p7 = scmp.lt.u32.totalorder %s1783_s27, %s2208_s7 }
  0x6b   :  { %p1789_p8 = pnand %p1787_p7, %p1784_p6 }
  0x6d   :  { %1792 = shalt.err (!%p1789_p8)
}
  0x6e   :  { %s1793_s30 = scalar_lea.vmem %s105_s26, 1024  ;;  %p1798_p10 = scmp.lt.s32.totalorder %s105_s26, %s105_s26 }
  0x6f   :  { %p1794_p9 = scmp.ne.s32.totalorder %s105_s26, %s1793_s30  ;;  %p1799_p11 = scmp.lt.s32.totalorder %s1793_s30, %s1793_s30 }
  0x71   :  { %p1800_p12 = por %p1799_p11, %p1798_p10 }
  0x73   :  { %p1801_p13 = pnand %p1800_p12, %p1794_p9 }
  0x75   :  { %1804 = shalt.err (!%p1801_p13)
}
  0x76   :  { %110 = dma.hbm_to_vmem [thread:$0]  %s2208_s7, 1024, %s105_s26, [#allocation12], %s1841_s1, %s1841_s1, %s1842_s19  }
  0x77   :  { %1827 = dma.done.wait [#allocation3], 512  }
  0x78   :  { %1828 = vsyncadd [#allocation3], 4294966784 }
  0x79   :  { %1829 = dma.done.wait [#allocation6], 768  }
  0x7a   :  { %1830 = vsyncadd [#allocation6], 4294966528 }
  0x7b   :  { %1831 = dma.done.wait [#allocation9], 2048  }
  0x7c   :  { %1832 = vsyncadd [#allocation9], 4294965248 }
  0x7d   :  { %1833 = dma.done.wait [#allocation12], 2048  }
  0x7e   :  { %1834 = vsyncadd [#allocation12], 4294965248  ;;  %v1848_v0 = vmov 0.0   ;;  %vm1849_vm0 = vmmov 0   ;;  %v2060_v1 = vld [vmem:[#allocation2] sm:$0xff]  ;;  %v2062_v2 = vld [vmem:[#allocation2 + $0x8] sm:$0xff] }
  0x7f   :  { %1421 = vmatprep.subr.bf16.mxu1 %v1848_v0  ;;  %1423 = vmatprep.mubr.msk.bf16.mxu1 %vm1849_vm0, %v1848_v0  ;;  %v151_v3 = vpack.c.bf16 %v2062_v2, %v2060_v1  ;;  %v2066_v4 = vld [vmem:[#allocation2 + $0x10] sm:$0xff]  ;;  %v2068_v5 = vld [vmem:[#allocation2 + $0x18] sm:$0xff]  ;;  %v159_v8 = vld [vmem:[#allocation7] sm:$0xff]  ;;  %vm251_vm1 = vcmask 130048   ;;  %s1850_s0 = smov [#allocation14]  }
  0x80   :  { %v2073_v6 = vpack.c.bf16 %v2068_v5, %v2066_v4  ;;  %v160_v12 = vld [vmem:[#allocation7 + $0x8] sm:$0xff]  ;;  %v1563_v49 = vld [vmem:[#allocation8] sm:$0xff]   ;;  %v1564_v50 = vld [vmem:[#allocation8 + $0x8] sm:$0xff]   ;;  %s1306_s23 = sshll.u32 %s1850_s0, 4  ;;  %s1307_s23 = int_to_ptr.vmem [resolvable:$true] %s1306_s23 }
  0x81   :  { %1422 = vmatpush3.bf16.xpose.msra.mxu1 %v151_v3  ;;  %1445 = vmatprep.subr.bf16.mxu0 %v1563_v49  ;;  %v1565_v51 = vld [vmem:[#allocation8 + $0x10] sm:$0xff]   ;;  %v1566_v52 = vld [vmem:[#allocation8 + $0x18] sm:$0xff]   ;;  %v1567_v53 = vld [vmem:[#allocation8 + $0x20] sm:$0xff]   ;;  %p1810_p1 = scmp.lt.s32.totalorder %s1307_s23, %s1307_s23 }
  0x82   :  { %1427 = vmatprep.subr.bf16.mxu1 %v1848_v0  ;;  %1446 = vmatpush3.bf16.msra.mxu0 %v1563_v49 }
  0x83   :  { %1447 = vmatprep.subr.bf16.mxu0 %v1564_v50 }
  0x86   :  { %1448 = vmatpush3.bf16.msra.mxu0 %v1564_v50 }
  0x87   :  { %1449 = vmatprep.subr.bf16.mxu0 %v1565_v51 }
  0x88   :  { %1424 = vmatmul.mubr.bf16.vlgmr.msra.gmra.mrb[0].mxu1 %v151_v3 }
  0x89   :  { %1428 = vmatpush3.bf16.xpose.msra.mxu1 %v2073_v6  ;;  %1429 = vmatprep.mubr.msk.bf16.mxu1 %vm1849_vm0, %v1848_v0 }
  0x8a   :  { %1433 = vmatprep.subr.bf16.mxu1 %v1848_v0  ;;  %1450 = vmatpush3.bf16.msra.mxu0 %v1565_v51 }
  0x8b   :  { %1451 = vmatprep.subr.bf16.mxu0 %v1566_v52 }
  0x8e   :  { %1452 = vmatpush3.bf16.msra.mxu0 %v1566_v52 }
  0x8f   :  { %1453 = vmatprep.subr.bf16.mxu0 %v1567_v53 }
  0x90   :  { %1430 = vmatmul.mubr.bf16.vlgmr.msra.gmra.mrb[4].mxu1 %v2073_v6 }
  0x91   :  { %1434 = vmatpush3.bf16.msra.mxu1 %v151_v3  ;;  %1435 = vmatprep.mubr.msk.bf16.mxu1 %vm1849_vm0, %v1848_v0 }
  0x92   :  { %1439 = vmatprep.subr.bf16.mxu1 %v1848_v0  ;;  %1454 = vmatpush3.bf16.msra.mxu0 %v1567_v53 }
 0x15b   :  { %v195_v7 = vpop.f32.mrb[0].mxu1 }
 0x15c   :  { %v243_v9 = vmul.f32 0.17677669, %v195_v7  ;;  %v1425_v10 = vpop.f32.mrb[1].mxu1 }
 0x15d   :  { %v198_v11 = vpop.f32.mrb[2].mxu1  ;;  %v1568_v10 = vld [vmem:[#allocation8 + $0x28] sm:$0xff]  }
 0x15e   :  { %v244_v13 = vmul.f32 0.17677669, %v198_v11  ;;  %v1426_v14 = vpop.f32.mrb[3].mxu1  ;;  %v247_v15 = vadd.f32 %v243_v9, %v159_v8  ;;  %1455 = vmatprep.subr.bf16.mxu0 %v1568_v10  ;;  %v1569_v11 = vld [vmem:[#allocation8 + $0x30] sm:$0xff]  }
 0x15f   :  { %1456 = vmatpush3.bf16.msra.mxu0 %v1568_v10 }
 0x160   :  { %v252_v16 = vsel %vm251_vm1, %v247_v15, -inf  ;;  %v248_v17 = vadd.f32 %v244_v13, %v160_v12  ;;  %1457 = vmatprep.subr.bf16.mxu0 %v1569_v11 }
 0x161   :  { %253 = vmax.xlane.f32.xlu0 %v252_v16 }
 0x162   :  { %v255_v21 = vsel %vm251_vm1, %v248_v17, -inf }
 0x163   :  { %v236_v18 = vpop.f32.mrb[4].mxu1  ;;  %1458 = vmatpush3.bf16.msra.mxu0 %v1569_v11 }
 0x164   :  { %v245_v19 = vmul.f32 0.17677669, %v236_v18  ;;  %v1431_v20 = vpop.f32.mrb[5].mxu1 }
 0x165   :  { %256 = vmax.xlane.f32.xlu0 %v255_v21  ;;  %v239_v22 = vpop.f32.mrb[6].mxu1 }
 0x166   :  { %v246_v23 = vmul.f32 0.17677669, %v239_v22  ;;  %v1432_v24 = vpop.f32.mrb[7].mxu1  ;;  %v249_v25 = vadd.f32 %v245_v19, %v159_v8 }
 0x168   :  { %v258_v26 = vsel %vm251_vm1, %v249_v25, -inf  ;;  %v250_v27 = vadd.f32 %v246_v23, %v160_v12 }
 0x169   :  { %259 = vmax.xlane.f32.xlu1 %v258_v26 }
 0x16a   :  { %v261_v28 = vsel %vm251_vm1, %v250_v27, -inf }
 0x16d   :  { %262 = vmax.xlane.f32.xlu1 %v261_v28 }
 0x1ee   :  { %v254_v29 = vpop.xlane.xlu0 %253 }
 0x1ef   :  { %v264_v30 = vsub.f32 %v247_v15, %v254_v29 }
 0x1f1   :  { %v268_v31 = vmul.f32 1.442695, %v264_v30 }
 0x1f2   :  { %v257_v32 = vpop.xlane.xlu0 %256 }
 0x1f3   :  { %1595 = vpow2.f32 %v268_v31  ;;  %v265_v33 = vsub.f32 %v248_v17, %v257_v32 }
 0x1f5   :  { %v270_v34 = vmul.f32 1.442695, %v265_v33 }
 0x1f6   :  { %v260_v35 = vpop.xlane.xlu1 %259 }
 0x1f7   :  { %1597 = vpow2.f32 %v270_v34  ;;  %v266_v36 = vsub.f32 %v249_v25, %v260_v35 }
 0x1f9   :  { %v272_v37 = vmul.f32 1.442695, %v266_v36 }
 0x1fa   :  { %v263_v38 = vpop.xlane.xlu1 %262 }
 0x1fb   :  { %1599 = vpow2.f32 %v272_v37  ;;  %v267_v39 = vsub.f32 %v250_v27, %v263_v38 }
 0x1fd   :  { %v1596_v40 = vpop.eup %1595  ;;  %v274_v41 = vmul.f32 1.442695, %v267_v39 }
 0x1fe   :  { %v276_v42 = vsel %vm251_vm1, %v1596_v40, 0.0 }
 0x1ff   :  { %1601 = vpow2.f32 %v274_v41  ;;  %277 = vadd.xlane.f32.xlu0 %v276_v42  ;;  %v153_v42 = vld [vmem:[#allocation5] sm:$0xff] }
 0x201   :  { %v1598_v43 = vpop.eup %1597 }
 0x202   :  { %v279_v44 = vsel %vm251_vm1, %v1598_v43, 0.0 }
 0x203   :  { %280 = vadd.xlane.f32.xlu1 %v279_v44 }
 0x205   :  { %v1600_v45 = vpop.eup %1599 }
 0x206   :  { %v282_v46 = vsel %vm251_vm1, %v1600_v45, 0.0 }
 0x207   :  { %283 = vadd.xlane.f32.xlu0 %v282_v46 }
 0x209   :  { %v1602_v47 = vpop.eup %1601 }
 0x20a   :  { %v285_v48 = vsel %vm251_vm1, %v1602_v47, 0.0 }
 0x20b   :  { %286 = vadd.xlane.f32.xlu1 %v285_v48 }
 0x28c   :  { %v278_v54 = vpop.xlane.xlu0 %277 }
 0x28d   :  { %1603 = vrcp.f32 %v278_v54 }
 0x290   :  { %v281_v55 = vpop.xlane.xlu1 %280 }
 0x291   :  { %1605 = vrcp.f32 %v281_v55 }
 0x294   :  { %v284_v56 = vpop.xlane.xlu0 %283 }
 0x295   :  { %1607 = vrcp.f32 %v284_v56 }
 0x297   :  { %v1604_v58 = vpop.eup %1603 }
 0x298   :  { %v287_v57 = vpop.xlane.xlu1 %286  ;;  %v292_v60 = vmul.f32 %v1604_v58, %v1596_v40  ;;  %v1331_v58 = vld [vmem:[%s2210_s9] ss:$0 sm:$0xff] }
 0x299   :  { %1609 = vrcp.f32 %v287_v57 }
 0x29b   :  { %v1606_v59 = vpop.eup %1605 }
 0x29c   :  { %v293_v61 = vmul.f32 %v1606_v59, %v1598_v43  ;;  %v154_v43 = vld [vmem:[#allocation5 + $0x8] sm:$0xff] }
 0x29d   :  { %v157_v44 = vpack.c.bf16 %v154_v43, %v153_v42 }
 0x29e   :  { %v296_v62 = vpack.c.bf16 %v293_v61, %v292_v60 }
 0x29f   :  { %v1608_v63 = vpop.eup %1607 }
 0x2a0   :  { %1436 = vmatmul.mubr.msk.bf16.vlgmr.msra.gmra.mrb[8].mxu1 %vm251_vm1, %v296_v62  ;;  %v294_v7 = vmul.f32 %v1608_v63, %v1600_v45 }
 0x2a1   :  { %1440 = vmatpush3.bf16.msra.mxu1 %v2073_v6  ;;  %1441 = vmatprep.mubr.msk.bf16.mxu1 %vm1849_vm0, %v1848_v0  ;;  %v1570_v6 = vld [vmem:[#allocation8 + $0x38] sm:$0xff]  }
 0x2a2   :  { %1465 = vmatprep.subr.bf16.mxu1 %v1848_v0  ;;  %1459 = vmatprep.subr.bf16.mxu0 %v1570_v6 }
 0x2a3   :  { %v1610_v3 = vpop.eup %1609  ;;  %1460 = vmatpush3.bf16.msra.mxu0 %v1570_v6 }
 0x2a4   :  { %v295_v8 = vmul.f32 %v1610_v3, %v1602_v47  ;;  %v1332_v3 = vld [vmem:[%s2211_s10] ss:$0 sm:$0xff] }
 0x2a6   :  { %v297_v9 = vpack.c.bf16 %v295_v8, %v294_v7  ;;  %v155_v8 = vld [vmem:[#allocation5 + $0x10] sm:$0xff] }
 0x2a8   :  { %1442 = vmatmul.mubr.msk.bf16.vlgmr.msra.gmra.mrb[12].mxu1 %vm251_vm1, %v297_v9  ;;  %v156_v9 = vld [vmem:[#allocation5 + $0x18] sm:$0xff] }
 0x2a9   :  { %1467 = vmatprep.mubr.msk.bf16.mxu1 %vm1849_vm0, %v1848_v0 }
 0x2aa   :  { %1466 = vmatpush3.bf16.xpose.msra.mxu1 %v157_v44 }
 0x2ab   :  { %1471 = vmatprep.subr.bf16.mxu1 %v1848_v0 }
 0x373   :  { %v335_v12 = vpop.f32.mrb[8].mxu1 }
 0x374   :  { %v1437_v13 = vpop.f32.mrb[9].mxu1 }
 0x375   :  { %v338_v14 = vpop.f32.mrb[10].mxu1 }
 0x376   :  { %v1438_v15 = vpop.f32.mrb[11].mxu1  ;;  %v386_v16 = vpack.c.bf16 %v338_v14, %v335_v12  ;;  %v2114_v14 = vpack.c.bf16 %v156_v9, %v155_v8 }
 0x378   :  { %1461 = vmatprep.mubr.bf16.mxu0 %v386_v16 }
 0x37b   :  { %v379_v17 = vpop.f32.mrb[12].mxu1 }
 0x37c   :  { %v1443_v18 = vpop.f32.mrb[13].mxu1 }
 0x37d   :  { %v382_v19 = vpop.f32.mrb[14].mxu1 }
 0x37e   :  { %v387_v20 = vpack.c.bf16 %v382_v19, %v379_v17  ;;  %v1444_v21 = vpop.f32.mrb[15].mxu1 }
 0x380   :  { %1462 = vmatmul.mubr.bf16.vlgmr.msra.gmra.mrb[0].mxu0 %v387_v20 }
 0x453   :  { %v1463_v22 = vpop.f32.mrb[0].mxu0 }
 0x454   :  { %v486_v23 = vpop.f32.mrb[1].mxu0  ;;  %v503_v28 = vadd.f32 %v1463_v22, %v2066_v4 }
 0x455   :  { %v501_v24 = vadd.f32 %v486_v23, %v2060_v1  ;;  %v1464_v25 = vpop.f32.mrb[2].mxu0 }
 0x456   :  { %v489_v26 = vpop.f32.mrb[3].mxu0  ;;  %v504_v29 = vadd.f32 %v1464_v25, %v2068_v5 }
 0x457   :  { %v502_v27 = vadd.f32 %v489_v26, %v2062_v2  ;;  %505 = vadd.xlane.f32.xlu0 %v501_v24 }
 0x459   :  { %507 = vadd.xlane.f32.xlu1 %v502_v27 }
 0x45b   :  { %509 = vadd.xlane.f32.xlu0 %v503_v28 }
 0x45d   :  { %511 = vadd.xlane.f32.xlu1 %v504_v29 }
 0x4e4   :  { %v506_v30 = vpop.xlane.xlu0 %505 }
 0x4e5   :  { %v514_v31 = vmul.f32 0.0078125, %v506_v30 }
 0x4e6   :  { %v508_v32 = vpop.xlane.xlu1 %507 }
 0x4e7   :  { %v518_v33 = vsub.f32 %v501_v24, %v514_v31  ;;  %v515_v34 = vmul.f32 0.0078125, %v508_v32 }
 0x4e8   :  { %v510_v35 = vpop.xlane.xlu0 %509 }
 0x4e9   :  { %v519_v36 = vsub.f32 %v502_v27, %v515_v34  ;;  %v516_v1 = vmul.f32 0.0078125, %v510_v35  ;;  %v522_v37 = vmul.f32 %v518_v33, %v518_v33 }
 0x4ea   :  { %v512_v38 = vpop.xlane.xlu1 %511 }
 0x4eb   :  { %v520_v39 = vsub.f32 %v503_v28, %v516_v1  ;;  %v517_v2 = vmul.f32 0.0078125, %v512_v38  ;;  %526 = vadd.xlane.f32.xlu0 %v522_v37  ;;  %v523_v40 = vmul.f32 %v519_v36, %v519_v36 }
 0x4ed   :  { %v521_v4 = vsub.f32 %v504_v29, %v517_v2  ;;  %528 = vadd.xlane.f32.xlu1 %v523_v40  ;;  %v524_v41 = vmul.f32 %v520_v39, %v520_v39 }
 0x4ef   :  { %530 = vadd.xlane.f32.xlu0 %v524_v41  ;;  %v525_v5 = vmul.f32 %v521_v4, %v521_v4 }
 0x4f1   :  { %532 = vadd.xlane.f32.xlu1 %v525_v5 }
 0x578   :  { %v527_v45 = vpop.xlane.xlu0 %526 }
 0x579   :  { %v534_v46 = vmul.f32 0.0078125, %v527_v45 }
 0x57a   :  { %v529_v47 = vpop.xlane.xlu1 %528 }
 0x57b   :  { %v538_v48 = vadd.f32 1e-05, %v534_v46  ;;  %v535_v49 = vmul.f32 0.0078125, %v529_v47 }
 0x57c   :  { %v531_v50 = vpop.xlane.xlu0 %530 }
 0x57d   :  { %1611 = vrsqrt.f32 %v538_v48  ;;  %v539_v51 = vadd.f32 1e-05, %v535_v49  ;;  %v536_v52 = vmul.f32 0.0078125, %v531_v50 }
 0x57e   :  { %v533_v53 = vpop.xlane.xlu1 %532 }
 0x57f   :  { %1613 = vrsqrt.f32 %v539_v51  ;;  %v540_v54 = vadd.f32 1e-05, %v536_v52  ;;  %v537_v55 = vmul.f32 0.0078125, %v533_v53  ;;  %v1571_v53 = vld [vmem:[#allocation10] sm:$0xff]  }
 0x580   :  { %1489 = vmatprep.subr.bf16.mxu0 %v1571_v53 }
 0x581   :  { %1615 = vrsqrt.f32 %v540_v54  ;;  %v541_v56 = vadd.f32 1e-05, %v537_v55  ;;  %v1572_v54 = vld [vmem:[#allocation10 + $0x8] sm:$0xff]   ;;  %1490 = vmatpush3.bf16.msra.mxu0 %v1571_v53  ;;  %v1573_v55 = vld [vmem:[#allocation10 + $0x10] sm:$0xff]   ;;  %v1587_v53 = vld [vmem:[#allocation13] sm:$0xff]  }
 0x582   :  { %1491 = vmatprep.subr.bf16.mxu0 %v1572_v54 }
 0x583   :  { %1617 = vrsqrt.f32 %v541_v56  ;;  %v1574_v56 = vld [vmem:[#allocation10 + $0x18] sm:$0xff]  }
 0x585   :  { %1492 = vmatpush3.bf16.msra.mxu0 %v1572_v54  ;;  %v1588_v54 = vld [vmem:[#allocation13 + $0x8] sm:$0xff]  }
 0x586   :  { %1493 = vmatprep.subr.bf16.mxu0 %v1573_v55 }
 0x587   :  { %v1612_v57 = vpop.eup %1611 }
 0x588   :  { %v546_v59 = vmul.f32 %v1612_v57, %v518_v33  ;;  %v1575_v57 = vld [vmem:[#allocation10 + $0x20] sm:$0xff]  }
 0x589   :  { %v1614_v60 = vpop.eup %1613  ;;  %1494 = vmatpush3.bf16.msra.mxu0 %v1573_v55  ;;  %v1589_v55 = vld [vmem:[#allocation13 + $0x10] sm:$0xff]  }
 0x58a   :  { %v547_v61 = vmul.f32 %v1614_v60, %v519_v36  ;;  %v557_v62 = vmul.f32 %v1331_v58, %v546_v59  ;;  %1495 = vmatprep.subr.bf16.mxu0 %v1574_v56 }
 0x58b   :  { %v1616_v63 = vpop.eup %1615 }
 0x58c   :  { %v558_v7 = vmul.f32 %v1331_v58, %v547_v61  ;;  %v548_v11 = vmul.f32 %v1616_v63, %v520_v39  ;;  %v2110_v12 = vadd.f32 %v1332_v3, %v557_v62 }
 0x58d   :  { %v1618_v10 = vpop.eup %1617  ;;  %1496 = vmatpush3.bf16.msra.mxu0 %v1574_v56  ;;  %v1590_v56 = vld [vmem:[#allocation13 + $0x18] sm:$0xff]  }
 0x58e   :  { %v549_v6 = vmul.f32 %v1618_v10, %v521_v4  ;;  %v2112_v13 = vadd.f32 %v1332_v3, %v558_v7  ;;  %v559_v17 = vmul.f32 %v1331_v58, %v548_v11  ;;  %1497 = vmatprep.subr.bf16.mxu0 %v1575_v57 }
 0x590   :  { %v572_v15 = vpack.c.bf16 %v2112_v13, %v2110_v12  ;;  %v560_v16 = vmul.f32 %v1331_v58, %v549_v6  ;;  %v2124_v19 = vadd.f32 %v1332_v3, %v559_v17  ;;  %v1577_v17 = vld [vmem:[#allocation10 + $0x30] sm:$0xff]  }
 0x591   :  { %1498 = vmatpush3.bf16.msra.mxu0 %v1575_v57  ;;  %v1591_v57 = vld [vmem:[#allocation13 + $0x20] sm:$0xff]  }
 0x592   :  { %1468 = vmatmul.mubr.bf16.vlgmr.msra.gmra.mrb[16].mxu1 %v572_v15  ;;  %v2121_v18 = vadd.f32 %v1332_v3, %v560_v16  ;;  %v1576_v16 = vld [vmem:[#allocation10 + $0x28] sm:$0xff]  }
 0x593   :  { %1472 = vmatpush3.bf16.xpose.msra.mxu1 %v2114_v14  ;;  %1473 = vmatprep.mubr.msk.bf16.mxu1 %vm1849_vm0, %v1848_v0 }
 0x594   :  { %1477 = vmatprep.subr.bf16.mxu1 %v1848_v0  ;;  %v573_v20 = vpack.c.bf16 %v2121_v18, %v2124_v19  ;;  %1499 = vmatprep.subr.bf16.mxu0 %v1576_v16 }
 0x595   :  { %1500 = vmatpush3.bf16.msra.mxu0 %v1576_v16  ;;  %v1343_v16 = vld [vmem:[%s2212_s11] ss:$0 sm:$0xff] }
 0x596   :  { %1501 = vmatprep.subr.bf16.mxu0 %v1577_v17 }
 0x599   :  { %1502 = vmatpush3.bf16.msra.mxu0 %v1577_v17 }
 0x59a   :  { %1474 = vmatmul.mubr.bf16.vlgmr.msra.gmra.mrb[20].mxu1 %v573_v20  ;;  %v1578_v20 = vld [vmem:[#allocation10 + $0x38] sm:$0xff]  }
 0x59b   :  { %1478 = vmatpush3.bf16.msra.mxu1 %v157_v44  ;;  %1479 = vmatprep.mubr.msk.bf16.mxu1 %vm1849_vm0, %v1848_v0 }
 0x59c   :  { %1483 = vmatprep.subr.bf16.mxu1 %v1848_v0  ;;  %1503 = vmatprep.subr.bf16.mxu0 %v1578_v20 }
 0x59d   :  { %1504 = vmatpush3.bf16.msra.mxu0 %v1578_v20 }
 0x59e   :  { %1529 = vmatprep.subr.bf16.mxu0 %v1587_v53 }
 0x665   :  { %v608_v21 = vpop.f32.mrb[16].mxu1 }
 0x666   :  { %v656_v22 = vmul.f32 0.17677669, %v608_v21  ;;  %v1469_v23 = vpop.f32.mrb[17].mxu1 }
 0x667   :  { %v611_v24 = vpop.f32.mrb[18].mxu1 }
 0x668   :  { %v657_v25 = vmul.f32 0.17677669, %v611_v24  ;;  %v1470_v26 = vpop.f32.mrb[19].mxu1  ;;  %v660_v27 = vsel %vm251_vm1, %v656_v22, -inf }
 0x669   :  { %661 = vmax.xlane.f32.xlu0 %v660_v27 }
 0x66a   :  { %v663_v28 = vsel %vm251_vm1, %v657_v25, -inf }
 0x66b   :  { %664 = vmax.xlane.f32.xlu1 %v663_v28 }
 0x66d   :  { %v649_v29 = vpop.f32.mrb[20].mxu1 }
 0x66e   :  { %v658_v30 = vmul.f32 0.17677669, %v649_v29  ;;  %v1475_v31 = vpop.f32.mrb[21].mxu1 }
 0x66f   :  { %v652_v32 = vpop.f32.mrb[22].mxu1 }
 0x670   :  { %v659_v33 = vmul.f32 0.17677669, %v652_v32  ;;  %v1476_v34 = vpop.f32.mrb[23].mxu1  ;;  %v666_v35 = vsel %vm251_vm1, %v658_v30, -inf }
 0x671   :  { %667 = vmax.xlane.f32.xlu0 %v666_v35 }
 0x672   :  { %v669_v36 = vsel %vm251_vm1, %v659_v33, -inf }
 0x673   :  { %670 = vmax.xlane.f32.xlu1 %v669_v36 }
 0x6f6   :  { %v662_v1 = vpop.xlane.xlu0 %661 }
 0x6f7   :  { %v672_v37 = vsub.f32 %v656_v22, %v662_v1  ;;  %v1579_v1 = vld [vmem:[#allocation11] sm:$0xff]  }
 0x6f8   :  { %v665_v38 = vpop.xlane.xlu1 %664 }
 0x6f9   :  { %v676_v39 = vmul.f32 1.442695, %v672_v37  ;;  %v673_v2 = vsub.f32 %v657_v25, %v665_v38 }
 0x6fb   :  { %1619 = vpow2.f32 %v676_v39  ;;  %v678_v40 = vmul.f32 1.442695, %v673_v2 }
 0x6fd   :  { %1621 = vpow2.f32 %v678_v40 }
 0x6fe   :  { %v668_v4 = vpop.xlane.xlu0 %667 }
 0x6ff   :  { %v674_v41 = vsub.f32 %v658_v30, %v668_v4 }
 0x700   :  { %v671_v5 = vpop.xlane.xlu1 %670 }
 0x701   :  { %v680_v42 = vmul.f32 1.442695, %v674_v41  ;;  %v675_v43 = vsub.f32 %v659_v33, %v671_v5 }
 0x703   :  { %1623 = vpow2.f32 %v680_v42  ;;  %v682_v44 = vmul.f32 1.442695, %v675_v43 }
 0x705   :  { %v1620_v45 = vpop.eup %1619  ;;  %1625 = vpow2.f32 %v682_v44 }
 0x706   :  { %v684_v46 = vsel %vm251_vm1, %v1620_v45, 0.0 }
 0x707   :  { %v1622_v47 = vpop.eup %1621  ;;  %685 = vadd.xlane.f32.xlu0 %v684_v46  ;;  %v1580_v46 = vld [vmem:[#allocation11 + $0x8] sm:$0xff]  }
 0x708   :  { %v687_v48 = vsel %vm251_vm1, %v1622_v47, 0.0 }
 0x709   :  { %688 = vadd.xlane.f32.xlu1 %v687_v48  ;;  %v1582_v48 = vld [vmem:[#allocation11 + $0x18] sm:$0xff]  }
 0x70d   :  { %v1624_v49 = vpop.eup %1623 }
 0x70e   :  { %v690_v50 = vsel %vm251_vm1, %v1624_v49, 0.0 }
 0x70f   :  { %v1626_v51 = vpop.eup %1625  ;;  %691 = vadd.xlane.f32.xlu0 %v690_v50  ;;  %v1584_v50 = vld [vmem:[#allocation11 + $0x28] sm:$0xff]  }
 0x710   :  { %v693_v52 = vsel %vm251_vm1, %v1626_v51, 0.0 }
 0x711   :  { %694 = vadd.xlane.f32.xlu1 %v693_v52  ;;  %v1586_v52 = vld [vmem:[#allocation11 + $0x38] sm:$0xff]  }
 0x794   :  { %v686_v58 = vpop.xlane.xlu0 %685 }
 0x795   :  { %1627 = vrcp.f32 %v686_v58  ;;  %v1592_v58 = vld [vmem:[#allocation13 + $0x28] sm:$0xff]  }
 0x796   :  { %v689_v59 = vpop.xlane.xlu1 %688 }
 0x797   :  { %1629 = vrcp.f32 %v689_v59 }
 0x79c   :  { %v692_v60 = vpop.xlane.xlu0 %691 }
 0x79d   :  { %1631 = vrcp.f32 %v692_v60 }
 0x79e   :  { %v695_v61 = vpop.xlane.xlu1 %694 }
 0x79f   :  { %v1628_v62 = vpop.eup %1627  ;;  %1633 = vrcp.f32 %v695_v61 }
 0x7a0   :  { %v700_v3 = vmul.f32 %v1628_v62, %v1620_v45 }
 0x7a1   :  { %v1630_v63 = vpop.eup %1629 }
 0x7a2   :  { %v701_v7 = vmul.f32 %v1630_v63, %v1622_v47  ;;  %v1581_v47 = vld [vmem:[#allocation11 + $0x10] sm:$0xff]  }
 0x7a4   :  { %v704_v8 = vpack.c.bf16 %v701_v7, %v700_v3 }
 0x7a6   :  { %1480 = vmatmul.mubr.msk.bf16.vlgmr.msra.gmra.mrb[24].mxu1 %vm251_vm1, %v704_v8 }
 0x7a7   :  { %v1632_v9 = vpop.eup %1631  ;;  %1484 = vmatpush3.bf16.msra.mxu1 %v2114_v14  ;;  %1485 = vmatprep.mubr.msk.bf16.mxu1 %vm1849_vm0, %v1848_v0 }
 0x7a8   :  { %v702_v11 = vmul.f32 %v1632_v9, %v1624_v49  ;;  %1509 = vmatprep.subr.bf16.mxu1 %v1579_v1  ;;  %v1583_v49 = vld [vmem:[#allocation11 + $0x20] sm:$0xff]  }
 0x7a9   :  { %v1634_v10 = vpop.eup %1633 }
 0x7aa   :  { %v703_v6 = vmul.f32 %v1634_v10, %v1626_v51  ;;  %v1585_v51 = vld [vmem:[#allocation11 + $0x30] sm:$0xff]  }
 0x7ac   :  { %v705_v15 = vpack.c.bf16 %v703_v6, %v702_v11 }
 0x7ae   :  { %1486 = vmatmul.mubr.msk.bf16.vlgmr.msra.gmra.mrb[28].mxu1 %vm251_vm1, %v705_v15 }
 0x7af   :  { %1510 = vmatpush3.bf16.msra.mxu1 %v1579_v1  ;;  %v1345_v1 = vld [vmem:[%s2207_s6] ss:$0 sm:$0xff] }
 0x7b0   :  { %1511 = vmatprep.subr.bf16.mxu1 %v1580_v46 }
 0x7b3   :  { %1512 = vmatpush3.bf16.msra.mxu1 %v1580_v46 }
 0x7b4   :  { %1513 = vmatprep.subr.bf16.mxu1 %v1581_v47 }
 0x7b7   :  { %1514 = vmatpush3.bf16.msra.mxu1 %v1581_v47 }
 0x7b8   :  { %1515 = vmatprep.subr.bf16.mxu1 %v1582_v48 }
 0x7bb   :  { %1516 = vmatpush3.bf16.msra.mxu1 %v1582_v48 }
 0x7bc   :  { %1517 = vmatprep.subr.bf16.mxu1 %v1583_v49 }
 0x7bf   :  { %1518 = vmatpush3.bf16.msra.mxu1 %v1583_v49 }
 0x7c0   :  { %1519 = vmatprep.subr.bf16.mxu1 %v1584_v50 }
 0x7c3   :  { %1520 = vmatpush3.bf16.msra.mxu1 %v1584_v50 }
 0x7c4   :  { %1521 = vmatprep.subr.bf16.mxu1 %v1585_v51 }
 0x7c7   :  { %1522 = vmatpush3.bf16.msra.mxu1 %v1585_v51 }
 0x7c8   :  { %1523 = vmatprep.subr.bf16.mxu1 %v1586_v52 }
 0x7cb   :  { %1524 = vmatpush3.bf16.msra.mxu1 %v1586_v52 }
 0x879   :  { %v743_v21 = vpop.f32.mrb[24].mxu1 }
 0x87a   :  { %v1481_v14 = vpop.f32.mrb[25].mxu1 }
 0x87b   :  { %v746_v22 = vpop.f32.mrb[26].mxu1 }
 0x87c   :  { %v794_v23 = vpack.c.bf16 %v746_v22, %v743_v21  ;;  %v1482_v0 = vpop.f32.mrb[27].mxu1 }
 0x87e   :  { %1505 = vmatprep.mubr.bf16.mxu0 %v794_v23  ;;  %v1344_v23 = vld [vmem:[%s2213_s12] ss:$0 sm:$0xff] }
 0x881   :  { %v787_v24 = vpop.f32.mrb[28].mxu1 }
 0x882   :  { %v1487_v25 = vpop.f32.mrb[29].mxu1 }
 0x883   :  { %v790_v26 = vpop.f32.mrb[30].mxu1 }
 0x884   :  { %v795_v27 = vpack.c.bf16 %v790_v26, %v787_v24  ;;  %v1488_v28 = vpop.f32.mrb[31].mxu1 }
 0x886   :  { %1506 = vmatmul.mubr.bf16.vlgmr.msra.gmra.mrb[4].mxu0 %v795_v27 }
 0x887   :  { %1530 = vmatpush3.bf16.msra.mxu0 %v1587_v53 }
 0x888   :  { %1531 = vmatprep.subr.bf16.mxu0 %v1588_v54 }
 0x88b   :  { %1532 = vmatpush3.bf16.msra.mxu0 %v1588_v54 }
 0x88c   :  { %1533 = vmatprep.subr.bf16.mxu0 %v1589_v55 }
 0x88f   :  { %1534 = vmatpush3.bf16.msra.mxu0 %v1589_v55 }
 0x890   :  { %1535 = vmatprep.subr.bf16.mxu0 %v1590_v56 }
 0x893   :  { %1536 = vmatpush3.bf16.msra.mxu0 %v1590_v56 }
 0x894   :  { %1537 = vmatprep.subr.bf16.mxu0 %v1591_v57 }
 0x897   :  { %1538 = vmatpush3.bf16.msra.mxu0 %v1591_v57 }
 0x898   :  { %1539 = vmatprep.subr.bf16.mxu0 %v1592_v58 }
 0x89b   :  { %1540 = vmatpush3.bf16.msra.mxu0 %v1592_v58 }
 0x959   :  { %v1507_v29 = vpop.f32.mrb[4].mxu0 }
 0x95a   :  { %v894_v30 = vpop.f32.mrb[5].mxu0  ;;  %v911_v35 = vadd.f32 %v1507_v29, %v2124_v19 }
 0x95b   :  { %v909_v31 = vadd.f32 %v894_v30, %v2110_v12  ;;  %v1508_v32 = vpop.f32.mrb[6].mxu0 }
 0x95c   :  { %v897_v33 = vpop.f32.mrb[7].mxu0  ;;  %v912_v36 = vadd.f32 %v1508_v32, %v2121_v18 }
 0x95d   :  { %v910_v34 = vadd.f32 %v897_v33, %v2112_v13  ;;  %913 = vadd.xlane.f32.xlu0 %v909_v31 }
 0x95f   :  { %915 = vadd.xlane.f32.xlu1 %v910_v34 }
 0x961   :  { %917 = vadd.xlane.f32.xlu0 %v911_v35 }
 0x963   :  { %919 = vadd.xlane.f32.xlu1 %v912_v36 }
 0x9ea   :  { %v914_v37 = vpop.xlane.xlu0 %913 }
 0x9eb   :  { %v921_v38 = vmul.f32 0.0078125, %v914_v37 }
 0x9ec   :  { %v916_v39 = vpop.xlane.xlu1 %915 }
 0x9ed   :  { %v2148_v2 = vsub.f32 %v909_v31, %v921_v38  ;;  %v922_v12 = vmul.f32 0.0078125, %v916_v39 }
 0x9ee   :  { %v918_v40 = vpop.xlane.xlu0 %917 }
 0x9ef   :  { %v2150_v4 = vsub.f32 %v910_v34, %v922_v12  ;;  %v923_v13 = vmul.f32 0.0078125, %v918_v40  ;;  %v929_v19 = vmul.f32 %v2148_v2, %v2148_v2 }
 0x9f0   :  { %v920_v41 = vpop.xlane.xlu1 %919 }
 0x9f1   :  { %v2154_v18 = vsub.f32 %v911_v35, %v923_v13  ;;  %v924_v5 = vmul.f32 0.0078125, %v920_v41  ;;  %933 = vadd.xlane.f32.xlu0 %v929_v19  ;;  %v930_v42 = vmul.f32 %v2150_v4, %v2150_v4  ;;  %v1593_v35 = vld [vmem:[#allocation13 + $0x30] sm:$0xff]  }
 0x9f2   :  { %1541 = vmatprep.subr.bf16.mxu0 %v1593_v35 }
 0x9f3   :  { %v2158_v43 = vsub.f32 %v912_v36, %v924_v5  ;;  %935 = vadd.xlane.f32.xlu1 %v930_v42  ;;  %v931_v44 = vmul.f32 %v2154_v18, %v2154_v18  ;;  %1542 = vmatpush3.bf16.msra.mxu0 %v1593_v35  ;;  %v1594_v36 = vld [vmem:[#allocation13 + $0x38] sm:$0xff]  }
 0x9f4   :  { %1543 = vmatprep.subr.bf16.mxu0 %v1594_v36 }
 0x9f5   :  { %937 = vadd.xlane.f32.xlu0 %v931_v44  ;;  %v932_v45 = vmul.f32 %v2158_v43, %v2158_v43  ;;  %v1354_v44 = vld [vmem:[%s2209_s8] ss:$0 sm:$0xff] }
 0x9f7   :  { %939 = vadd.xlane.f32.xlu1 %v932_v45  ;;  %1544 = vmatpush3.bf16.msra.mxu0 %v1594_v36 }
 0xa7e   :  { %v934_v59 = vpop.xlane.xlu0 %933 }
 0xa7f   :  { %v941_v60 = vmul.f32 0.0078125, %v934_v59 }
 0xa80   :  { %v936_v61 = vpop.xlane.xlu1 %935 }
 0xa81   :  { %v945_v62 = vadd.f32 1e-05, %v941_v60  ;;  %v942_v63 = vmul.f32 0.0078125, %v936_v61 }
 0xa82   :  { %v938_v3 = vpop.xlane.xlu0 %937 }
 0xa83   :  { %1635 = vrsqrt.f32 %v945_v62  ;;  %v946_v7 = vadd.f32 1e-05, %v942_v63  ;;  %v943_v8 = vmul.f32 0.0078125, %v938_v3 }
 0xa84   :  { %v940_v9 = vpop.xlane.xlu1 %939 }
 0xa85   :  { %1637 = vrsqrt.f32 %v946_v7  ;;  %v947_v10 = vadd.f32 1e-05, %v943_v8  ;;  %v944_v11 = vmul.f32 0.0078125, %v940_v9 }
 0xa87   :  { %1639 = vrsqrt.f32 %v947_v10  ;;  %v948_v6 = vadd.f32 1e-05, %v944_v11 }
 0xa89   :  { %1641 = vrsqrt.f32 %v948_v6 }
 0xa8d   :  { %v1636_v15 = vpop.eup %1635 }
 0xa8e   :  { %v953_v17 = vmul.f32 %v1636_v15, %v2148_v2 }
 0xa8f   :  { %v1638_v20 = vpop.eup %1637 }
 0xa90   :  { %v954_v21 = vmul.f32 %v1638_v20, %v2150_v4  ;;  %v964_v14 = vmul.f32 %v1343_v16, %v953_v17 }
 0xa91   :  { %v1640_v22 = vpop.eup %1639 }
 0xa92   :  { %v955_v0 = vmul.f32 %v1640_v22, %v2154_v18  ;;  %v965_v24 = vmul.f32 %v1343_v16, %v954_v21  ;;  %v975_v27 = vadd.f32 %v1344_v23, %v964_v14 }
 0xa93   :  { %v1642_v25 = vpop.eup %1641 }
 0xa94   :  { %v956_v26 = vmul.f32 %v1642_v25, %v2158_v43  ;;  %v976_v28 = vadd.f32 %v1344_v23, %v965_v24  ;;  %v966_v29 = vmul.f32 %v1343_v16, %v955_v0 }
 0xa96   :  { %v979_v30 = vpack.c.bf16 %v976_v28, %v975_v27  ;;  %v967_v31 = vmul.f32 %v1343_v16, %v956_v26  ;;  %v977_v32 = vadd.f32 %v1344_v23, %v966_v29 }
 0xa98   :  { %1525 = vmatprep.mubr.bf16.mxu1 %v979_v30  ;;  %v978_v33 = vadd.f32 %v1344_v23, %v967_v31  ;;  %v1363_v30 = vld [vmem:[%s2214_s13] ss:$0 sm:$0xff]  ;;  %s1805_s13 = scalar_lea.vmem %s1307_s23, 512 }
 0xa99   :  { %p1806_p0 = scmp.ne.s32.totalorder %s1307_s23, %s1805_s13  ;;  %p1811_p2 = scmp.lt.s32.totalorder %s1805_s13, %s1805_s13 }
 0xa9a   :  { %v980_v34 = vpack.c.bf16 %v978_v33, %v977_v32 }
 0xa9b   :  { %p1812_p3 = por %p1811_p2, %p1810_p1 }
 0xa9c   :  { %1526 = vmatmul.mubr.bf16.vlgmr.msra.gmra.mrb[32].mxu1 %v980_v34 }
 0xa9d   :  { %p1813_p4 = pnand %p1812_p3, %p1806_p0 }
 0xb6f   :  { %v1527_v37 = vpop.f32.mrb[32].mxu1 }
 0xb70   :  { %v1095_v38 = vadd.f32 %v1527_v37, %v1345_v1  ;;  %v1086_v39 = vpop.f32.mrb[33].mxu1 }
 0xb71   :  { %v1087_v2 = vadd.f32 %v1345_v1, %v1086_v39  ;;  %v1528_v12 = vpop.f32.mrb[34].mxu1 }
 0xb72   :  { %v1098_v40 = vadd.f32 %v1528_v12, %v1345_v1  ;;  %v1089_v4 = vpop.f32.mrb[35].mxu1  ;;  %v1103_v19 = vmax.f32 %v1095_v38, 0.0 }
 0xb73   :  { %v1090_v13 = vadd.f32 %v1345_v1, %v1089_v4  ;;  %v1101_v18 = vmax.f32 %v1087_v2, 0.0 }
 0xb74   :  { %v1104_v41 = vmax.f32 %v1098_v40, 0.0 }
 0xb75   :  { %v1102_v5 = vmax.f32 %v1090_v13, 0.0 }
 0xb76   :  { %v1106_v42 = vpack.c.bf16 %v1104_v41, %v1103_v19 }
 0xb77   :  { %v1105_v43 = vpack.c.bf16 %v1102_v5, %v1101_v18 }
 0xb79   :  { %1545 = vmatprep.mubr.bf16.mxu0 %v1105_v43 }
 0xb7a   :  { %1546 = vmatmul.mubr.bf16.vlgmr.msra.gmra.mrb[8].mxu0 %v1106_v42 }
 0xc4d   :  { %v1547_v45 = vpop.f32.mrb[8].mxu0 }
 0xc4e   :  { %v1212_v46 = vpop.f32.mrb[9].mxu0  ;;  %v1221_v50 = vadd.f32 %v1547_v45, %v1354_v44 }
 0xc4f   :  { %v1213_v47 = vadd.f32 %v1354_v44, %v1212_v46  ;;  %v1548_v48 = vpop.f32.mrb[10].mxu0 }
 0xc50   :  { %v1215_v49 = vpop.f32.mrb[11].mxu0  ;;  %v1224_v53 = vadd.f32 %v1548_v48, %v1354_v44  ;;  %v1229_v55 = vadd.f32 %v1221_v50, %v977_v32 }
 0xc51   :  { %v1216_v51 = vadd.f32 %v1354_v44, %v1215_v49  ;;  %v1227_v52 = vadd.f32 %v1213_v47, %v975_v27 }
 0xc52   :  { %v1230_v56 = vadd.f32 %v1224_v53, %v978_v33  ;;  %v1364_v33 = vld [vmem:[%s2215_s14] ss:$0 sm:$0xff] }
 0xc53   :  { %1231 = vadd.xlane.f32.xlu0 %v1227_v52  ;;  %v1228_v54 = vadd.f32 %v1216_v51, %v976_v28 }
 0xc55   :  { %1233 = vadd.xlane.f32.xlu1 %v1228_v54 }
 0xc57   :  { %1235 = vadd.xlane.f32.xlu0 %v1229_v55 }
 0xc59   :  { %1237 = vadd.xlane.f32.xlu1 %v1230_v56 }
 0xce0   :  { %v1232_v57 = vpop.xlane.xlu0 %1231 }
 0xce1   :  { %v1239_v58 = vmul.f32 0.0078125, %v1232_v57 }
 0xce2   :  { %v1234_v59 = vpop.xlane.xlu1 %1233 }
 0xce3   :  { %v1243_v60 = vsub.f32 %v1227_v52, %v1239_v58  ;;  %v1240_v61 = vmul.f32 0.0078125, %v1234_v59 }
 0xce4   :  { %v1236_v62 = vpop.xlane.xlu0 %1235 }
 0xce5   :  { %v1244_v63 = vsub.f32 %v1228_v54, %v1240_v61  ;;  %v1241_v3 = vmul.f32 0.0078125, %v1236_v62  ;;  %v1247_v7 = vmul.f32 %v1243_v60, %v1243_v60 }
 0xce6   :  { %v1238_v8 = vpop.xlane.xlu1 %1237 }
 0xce7   :  { %v1245_v9 = vsub.f32 %v1229_v55, %v1241_v3  ;;  %v1242_v10 = vmul.f32 0.0078125, %v1238_v8  ;;  %1251 = vadd.xlane.f32.xlu0 %v1247_v7  ;;  %v1248_v11 = vmul.f32 %v1244_v63, %v1244_v63 }
 0xce9   :  { %v1246_v6 = vsub.f32 %v1230_v56, %v1242_v10  ;;  %1253 = vadd.xlane.f32.xlu1 %v1248_v11  ;;  %v1249_v15 = vmul.f32 %v1245_v9, %v1245_v9 }
 0xceb   :  { %1255 = vadd.xlane.f32.xlu0 %v1249_v15  ;;  %v1250_v16 = vmul.f32 %v1246_v6, %v1246_v6 }
 0xced   :  { %1257 = vadd.xlane.f32.xlu1 %v1250_v16 }
 0xd74   :  { %v1252_v17 = vpop.xlane.xlu0 %1251 }
 0xd75   :  { %v1259_v20 = vmul.f32 0.0078125, %v1252_v17 }
 0xd76   :  { %v1254_v21 = vpop.xlane.xlu1 %1253 }
 0xd77   :  { %v1263_v14 = vadd.f32 1e-05, %v1259_v20  ;;  %v1260_v22 = vmul.f32 0.0078125, %v1254_v21 }
 0xd78   :  { %v1256_v23 = vpop.xlane.xlu0 %1255 }
 0xd79   :  { %1643 = vrsqrt.f32 %v1263_v14  ;;  %v1264_v0 = vadd.f32 1e-05, %v1260_v22  ;;  %v1261_v24 = vmul.f32 0.0078125, %v1256_v23 }
 0xd7a   :  { %v1258_v25 = vpop.xlane.xlu1 %1257 }
 0xd7b   :  { %1645 = vrsqrt.f32 %v1264_v0  ;;  %v1265_v26 = vadd.f32 1e-05, %v1261_v24  ;;  %v1262_v27 = vmul.f32 0.0078125, %v1258_v25 }
 0xd7d   :  { %1647 = vrsqrt.f32 %v1265_v26  ;;  %v1266_v28 = vadd.f32 1e-05, %v1262_v27 }
 0xd7f   :  { %1649 = vrsqrt.f32 %v1266_v28 }
 0xd83   :  { %v1644_v29 = vpop.eup %1643 }
 0xd84   :  { %v1271_v31 = vmul.f32 %v1644_v29, %v1243_v60 }
 0xd85   :  { %v1646_v32 = vpop.eup %1645 }
 0xd86   :  { %v1272_v34 = vmul.f32 %v1646_v32, %v1244_v63  ;;  %v1282_v35 = vmul.f32 %v1363_v30, %v1271_v31 }
 0xd87   :  { %v1648_v36 = vpop.eup %1647 }
 0xd88   :  { %v1273_v1 = vmul.f32 %v1648_v36, %v1245_v9  ;;  %v1283_v37 = vmul.f32 %v1363_v30, %v1272_v34  ;;  %v1293_v38 = vadd.f32 %v1364_v33, %v1282_v35 }
 0xd89   :  { %v1650_v39 = vpop.eup %1649 }
 0xd8a   :  { %v1274_v2 = vmul.f32 %v1650_v39, %v1246_v6  ;;  %v1284_v12 = vmul.f32 %v1363_v30, %v1273_v1  ;;  %v1294_v40 = vadd.f32 %v1364_v33, %v1283_v37  ;;  %1297 = vst [vmem:[#allocation14] sm:$0xff] %v1293_v38 }
 0xd8c   :  { %v1285_v4 = vmul.f32 %v1363_v30, %v1274_v2  ;;  %v1295_v13 = vadd.f32 %v1364_v33, %v1284_v12  ;;  %1298 = vst [vmem:[#allocation14 + $0x8] sm:$0xff] %v1294_v40 }
 0xd8e   :  { %v1296_v19 = vadd.f32 %v1364_v33, %v1285_v4  ;;  %1299 = vst [vmem:[#allocation14 + $0x10] sm:$0xff] %v1295_v13 }
 0xd90   :  { %1300 = vst [vmem:[#allocation14 + $0x18] sm:$0xff] %v1296_v19 }
 0xd91   :  { %1816 = shalt.err (!%p1813_p4)
}
 0xd92   :  { %s1817_s28 = scalar_lea.hbm %s2216_s15, 512 }
 0xd93   :  { %p1818_p5 = scmp.ne.s32.totalorder %s2216_s15, %s1817_s28  ;;  %p1821_p6 = scmp.lt.u32.totalorder %s1817_s28, %s2216_s15 }
 0xd95   :  { %p1823_p7 = pnand %p1821_p6, %p1818_p5 }
 0xd97   :  { %1826 = shalt.err (!%p1823_p7)
}
 0xd98   :  { %1312 = dma.vmem_to_hbm [thread:$0]  %s1307_s23, 512, %s2216_s15, [#allocation4], %s2222_s20, %s2222_s20, %s2221_s5  }
 0xd99   :  { %1835 = dma.done.wait [#allocation4], 512  }
 0xd9a   :  { %1836 = vsyncadd [#allocation4], 4294966784 }
 0xd9b   :  { %1316 = vsyncpa [#allocation3], 1 }
 0xd9c   :  { %1317 = vsyncpa [#allocation6], 1 }
 0xd9d   :  { %1318 = vsyncpa [#allocation9], 1 }
 0xd9e   :  { %1319 = vsyncpa [#allocation12], 1 }
 0xd9f   :  { %1320 = vsyncpa [#allocation4], 1 }

</bundles_post_ra>
